<compile_context>
chip_gen: v6e
topology: v6e:2x2x1
jax: 0.10.0
libtpu: 0.0.40
codegen_flags: <defaults>
</compile_context>

<pallas_src>
import jax
import jax.numpy as jnp
from jax.experimental import pallas as pl
from jax.experimental.pallas import tpu as pltpu

K = 4        # conv kernel size (4x4)
EPS = 1e-5   # BatchNorm eps (PyTorch default)

# Stride-parity decomposition tables for ConvTranspose2d(k=4, s=2, p=1):
#   output row 2*i+pr gets contributions from padded-y1 row i+ROFF[pr][a] weighted by
#   kernel tap KTAP[pr][a]  (identical tables for the column axis).
ROFF = ((0, 1), (1, 2))
KTAP = ((3, 1), (2, 0))


# ---------------- fused Pallas kernel ---------------- #

def _unet_inner_kernel(xs_ref, wd_ref, wu_ref, g_ref, b_ref, out_ref, y1p_ref):
    """LeakyReLU -> Conv(4,s2,p1) -> ReLU -> ConvT(4,s2,p1) -> BatchNorm2d, fused.

    Grid is over the batch.  The (pre-BN) outputs of all batch elements stay
    resident in the VMEM output block; BN statistics over the full N*H*W and the
    normalization are applied on the last grid step (matches torch training-mode
    BatchNorm2d exactly).  For much larger N*H*W*outer_nc this finalize step should
    be split into a stats pass + normalize pass instead of keeping y2 resident.
    """
    n = pl.program_id(0)
    last = pl.num_programs(0) - 1

    # ---- LeakyReLU(0.2) on the compact space-to-depth input (no im2col blowup) ----
    x = xs_ref[0]                                   # (H1+1, W1+1, 4*C_in)
    x = jnp.where(x >= 0, x, 0.2 * x)               # leaky_relu(pad 0) == 0, so OK
    h1 = x.shape[0] - 1
    w1 = x.shape[1] - 1
    inner = wd_ref.shape[1]
    outer = out_ref.shape[2] // 4

    # ---- down conv: stride-2 4x4 conv == 2x2 stride-1 conv on the s2d input.
    #      Patch matrix built in VMEM from 4 shifted windows -> single MXU matmul.
    p1 = jnp.concatenate(
        [x[a:a + h1, b:b + w1, :] for a in (0, 1) for b in (0, 1)], axis=-1)
    p1 = p1.reshape(h1 * w1, 4 * x.shape[2])
    y1 = jnp.dot(p1, wd_ref[...], preferred_element_type=jnp.float32)

    # ---- ReLU on compact y1; place into a zero-padded VMEM scratch (halo of 1) ----
    y1 = jnp.maximum(y1, 0.0)
    y1p_ref[...] = jnp.zeros_like(y1p_ref)
    y1p_ref[1:h1 + 1, 1:w1 + 1, :] = y1.reshape(h1, w1, inner)

    # ---- transposed conv via stride-parity decomposition (no zero-dilated buffer):
    #      4 parity planes, each one matmul with a 4*inner_nc contraction. ----
    planes = []
    for pr in (0, 1):
        for pc in (0, 1):
            wins = [y1p_ref[ROFF[pr][a]:ROFF[pr][a] + h1,
                            ROFF[pc][b]:ROFF[pc][b] + w1, :]
                    for a in (0, 1) for b in (0, 1)]
            p2 = jnp.concatenate(wins, axis=-1).reshape(h1 * w1, 4 * inner)
            planes.append(
                jnp.dot(p2, wu_ref[pr, pc], preferred_element_type=jnp.float32))
    # Pack the 4 parity planes along lanes -> one wide store (last dim = 4*outer_nc).
    out_ref[n] = jnp.concatenate(planes, axis=-1)

    # ---- BatchNorm2d (training mode, biased variance) on the last grid step ----
    @pl.when(n == last)
    def _():
        blk = out_ref[...]                               # (N, H1*W1, 4*outer) resident
        cnt = blk.shape[0] * blk.shape[1] * 4            # == N*H*W elements / channel
        s = jnp.sum(jnp.sum(blk, axis=0), axis=0, keepdims=True)        # (1, 4*outer)
        mean = (s[:, 0:outer] + s[:, outer:2 * outer]
                + s[:, 2 * outer:3 * outer] + s[:, 3 * outer:4 * outer]) / cnt
        mean4 = jnp.concatenate([mean, mean, mean, mean], axis=-1)
        d = blk - mean4
        s2 = jnp.sum(jnp.sum(d * d, axis=0), axis=0, keepdims=True)
        var = (s2[:, 0:outer] + s2[:, outer:2 * outer]
               + s2[:, 2 * outer:3 * outer] + s2[:, 3 * outer:4 * outer]) / cnt
        scale = g_ref[...] * jax.lax.rsqrt(var + EPS)                    # (1, outer)
        scale4 = jnp.concatenate([scale] * 4, axis=-1)
        beta4 = jnp.concatenate([b_ref[...]] * 4, axis=-1)
        out_ref[...] = d * scale4 + beta4


# ---------------- wrapper (layout plumbing only, fused by XLA) ---------------- #

def unet_innermost_block(x_nchw, params):
    """Forward of UnetSkipConnectionBlock(outer_nc, inner_nc, innermost=True).

    x_nchw: (N, input_nc, H, W) float32  ->  (N, input_nc + outer_nc, H, W)
    """
    w_down, w_up, gamma, beta = params
    n, cin, h, w = x_nchw.shape
    inner = w_down.shape[0]
    outer = w_up.shape[1]
    h1, w1 = h // 2, w // 2

    # Prologue: NHWC + pad(1) + space-to-depth (folds the conv stride-2 into
    # channels).  One fused XLA copy over the compact input -- replaces the old
    # 16x im2col materialization.
    xp = jnp.pad(jnp.transpose(x_nchw, (0, 2, 3, 1)),
                 ((0, 0), (1, 1), (1, 1), (0, 0)))
    xs2d = (xp.reshape(n, h1 + 1, 2, w1 + 1, 2, cin)
              .transpose(0, 1, 3, 2, 4, 5)
              .reshape(n, h1 + 1, w1 + 1, 4 * cin))

    # Weight packing (tiny, once per call).
    # Down conv weight -> (16*C_in, inner_nc) matching the in-kernel patch order.
    wd = (w_down.reshape(inner, cin, 2, 2, 2, 2)       # (co, ci, a, p, b, q)
                .transpose(2, 4, 3, 5, 1, 0)            # (a, b, p, q, ci, co)
                .reshape(16 * cin, inner))
    # Up (transposed) conv weight -> per-parity (4*inner_nc, outer_nc) matrices.
    kt = jnp.array(KTAP, dtype=jnp.int32)
    wu = w_up[:, :, kt[:, :, None, None], kt[None, None, :, :]]   # (ci,co,pr,a,pc,b)
    wu = wu.transpose(2, 4, 3, 5, 0, 1).reshape(2, 2, 4 * inner, outer)

    out = pl.pallas_call(
        _unet_inner_kernel,
        out_shape=jax.ShapeDtypeStruct((n, h1 * w1, 4 * outer), jnp.float32),
        grid_spec=pltpu.PrefetchScalarGridSpec(
            num_scalar_prefetch=0,
            grid=(n,),
            in_specs=[
                pl.BlockSpec((1, h1 + 1, w1 + 1, 4 * cin), lambda i: (i, 0, 0, 0)),
                pl.BlockSpec((16 * cin, inner), lambda i: (0, 0)),
                pl.BlockSpec((2, 2, 4 * inner, outer), lambda i: (0, 0, 0, 0)),
                pl.BlockSpec((1, outer), lambda i: (0, 0)),
                pl.BlockSpec((1, outer), lambda i: (0, 0)),
            ],
            # Output block = full tensor, resident in VMEM across the batch grid so
            # BatchNorm can use exact global statistics on the last step.
            out_specs=pl.BlockSpec((n, h1 * w1, 4 * outer), lambda i: (0, 0, 0)),
            scratch_shapes=[pltpu.VMEM((h1 + 2, w1 + 2, inner), jnp.float32)],
        ),
        # "arbitrary": the output block is revisited (BN finalize on the last step).
        compiler_params=pltpu.CompilerParams(dimension_semantics=("arbitrary",)),
    )(xs2d, wd, wu, gamma.reshape(1, -1), beta.reshape(1, -1))

    # Epilogue: parity interleave + NCHW + skip concat (one fused XLA copy).
    y = (out.reshape(n, h1, w1, 2, 2, outer)     # (n, i, j, pr, pc, co)
            .transpose(0, 1, 3, 2, 4, 5)          # (n, i, pr, j, pc, co)
            .reshape(n, h, w, outer)
            .transpose(0, 3, 1, 2))               # NCHW
    return jnp.concatenate([x_nchw, y], axis=1)   # cat([x, model(x)], 1)


# ---------------- pure-JAX reference (for self-check) ---------------- #

def reference(x, params):
    w_down, w_up, gamma, beta = params
    hp = jnp.where(x >= 0, x, 0.2 * x)
    y1 = jax.lax.conv_general_dilated(
        hp, w_down, window_strides=(2, 2), padding=((1, 1), (1, 1)),
        dimension_numbers=('NCHW', 'OIHW', 'NCHW'),
        precision=jax.lax.Precision.HIGHEST)
    r = jnp.maximum(y1, 0.0)
    w_up_conv = jnp.transpose(w_up[:, :, ::-1, ::-1], (1, 0, 2, 3))   # OIHW
    y2 = jax.lax.conv_general_dilated(
        r, w_up_conv, window_strides=(1, 1), padding=((2, 2), (2, 2)),
        lhs_dilation=(2, 2), dimension_numbers=('NCHW', 'OIHW', 'NCHW'),
        precision=jax.lax.Precision.HIGHEST)
    mean = jnp.mean(y2, axis=(0, 2, 3), keepdims=True)
    var = jnp.mean((y2 - mean) ** 2, axis=(0, 2, 3), keepdims=True)
    y2 = ((y2 - mean) * jax.lax.rsqrt(var + EPS)
          * gamma.reshape(1, -1, 1, 1) + beta.reshape(1, -1, 1, 1))
    return jnp.concatenate([x, y2], axis=1)


if __name__ == "__main__":
    key = jax.random.PRNGKey(0)
    k1, k2, k3, k4, kx = jax.random.split(key, 5)

    N, outer_nc, inner_nc, H, W = 2, 4, 8, 16, 16
    input_nc = outer_nc  # input_nc=None in the module -> defaults to outer_nc

    x = jax.random.normal(kx, (N, input_nc, H, W), jnp.float32)
    # Conv2d weight: (inner_nc, input_nc, 4, 4); ConvTranspose2d weight: (inner_nc, outer_nc, 4, 4)
    w_down = 0.1 * jax.random.normal(k1, (inner_nc, input_nc, K, K), jnp.float32)
    w_up = 0.1 * jax.random.normal(k2, (inner_nc, outer_nc, K, K), jnp.float32)
    gamma = 1.0 + 0.1 * jax.random.normal(k3, (outer_nc,), jnp.float32)
    beta = 0.1 * jax.random.normal(k4, (outer_nc,), jnp.float32)
    params = (w_down, w_up, gamma, beta)

    out = jax.jit(unet_innermost_block)(x, params)
    out = jax.block_until_ready(out)
    assert out.shape == (N, input_nc + outer_nc, H, W), out.shape

    ref = reference(x, params)
    err = float(jnp.max(jnp.abs(out - ref)))
    assert jnp.allclose(out, ref, atol=1e-3, rtol=1e-3), f"max abs err {err}"

    print("KERNEL_OK")
</pallas_src>

<mosaic_0001>
module attributes {stable_mosaic.version = 11 : i64} {
  func.func @_unet_inner_kernel(%arg0: i32, %arg1: memref<1x9x9x16xf32, #tpu.memory_space<vmem>>, %arg2: memref<64x8xf32, #tpu.memory_space<vmem>>, %arg3: memref<2x2x32x4xf32, #tpu.memory_space<vmem>>, %arg4: memref<1x4xf32, #tpu.memory_space<vmem>>, %arg5: memref<1x4xf32, #tpu.memory_space<vmem>>, %arg6: memref<2x64x16xf32, #tpu.memory_space<vmem>>, %arg7: memref<10x10x8xf32, #tpu.memory_space<vmem>>) attributes {dimension_semantics = [#tpu.dimension_semantics<arbitrary>], iteration_bounds = array<i64: 2>, scalar_prefetch = 0 : i64, scratch_operands = 1 : i64, tpu.core_type = #tpu.core_type<tc>, window_params = [{transform_indices = @transform_0, window_bounds = array<i64: 1, 9, 9, 16>}, {pipeline_mode = #tpu.pipeline_mode<synchronous>, transform_indices = @transform_1, window_bounds = array<i64: 64, 8>}, {pipeline_mode = #tpu.pipeline_mode<synchronous>, transform_indices = @transform_2, window_bounds = array<i64: 2, 2, 32, 4>}, {pipeline_mode = #tpu.pipeline_mode<synchronous>, transform_indices = @transform_3, window_bounds = array<i64: 1, 4>}, {pipeline_mode = #tpu.pipeline_mode<synchronous>, transform_indices = @transform_4, window_bounds = array<i64: 1, 4>}, {pipeline_mode = #tpu.pipeline_mode<synchronous>, transform_indices = @transform_5, window_bounds = array<i64: 2, 64, 16>}]} {
    %c0 = arith.constant 0 : index
    %c0_0 = arith.constant 0 : index
    %c0_1 = arith.constant 0 : index
    %c0_2 = arith.constant 0 : index
    %0 = vector.load %arg1[%c0, %c0_0, %c0_1, %c0_2] : memref<1x9x9x16xf32, #tpu.memory_space<vmem>>, vector<1x9x9x16xf32>
    %1 = vector.shape_cast %0 : vector<1x9x9x16xf32> to vector<9x9x16xf32>
    %cst = arith.constant 0.000000e+00 : f32
    %2 = vector.broadcast %cst : f32 to vector<9x9x16xf32>
    %3 = arith.cmpf oge, %1, %2 : vector<9x9x16xf32>
    %cst_3 = arith.constant 2.000000e-01 : f32
    %4 = vector.broadcast %cst_3 : f32 to vector<9x9x16xf32>
    %5 = arith.mulf %4, %1 : vector<9x9x16xf32>
    %6 = arith.select %3, %1, %5 : vector<9x9x16xi1>, vector<9x9x16xf32>
    %7 = vector.extract_strided_slice %6 {offsets = [0, 0, 0], sizes = [8, 8, 16], strides = [1, 1, 1]} : vector<9x9x16xf32> to vector<8x8x16xf32>
    %8 = vector.extract_strided_slice %6 {offsets = [0, 1, 0], sizes = [8, 8, 16], strides = [1, 1, 1]} : vector<9x9x16xf32> to vector<8x8x16xf32>
    %9 = vector.extract_strided_slice %6 {offsets = [1, 0, 0], sizes = [8, 8, 16], strides = [1, 1, 1]} : vector<9x9x16xf32> to vector<8x8x16xf32>
    %10 = vector.extract_strided_slice %6 {offsets = [1, 1, 0], sizes = [8, 8, 16], strides = [1, 1, 1]} : vector<9x9x16xf32> to vector<8x8x16xf32>
    %11 = tpu.concatenate %7, %8, %9, %10 in 2 : vector<8x8x16xf32>, vector<8x8x16xf32>, vector<8x8x16xf32>, vector<8x8x16xf32> -> vector<8x8x64xf32>
    %12 = vector.shape_cast %11 : vector<8x8x64xf32> to vector<64x64xf32>
    %c0_4 = arith.constant 0 : index
    %c0_5 = arith.constant 0 : index
    %13 = vector.load %arg2[%c0_4, %c0_5] : memref<64x8xf32, #tpu.memory_space<vmem>>, vector<64x8xf32>
    %cst_6 = arith.constant dense<0.000000e+00> : vector<64x8xf32>
    %14 = tpu.matmul %12, %13, %cst_6 {dimension_numbers = #tpu.dot_dimension_numbers<[1], [0], [0], [1], [0, 0, 1, 1], [], []>} : vector<64x64xf32>, vector<64x8xf32>, vector<64x8xf32> -> vector<64x8xf32>
    %cst_7 = arith.constant 0.000000e+00 : f32
    %15 = vector.broadcast %cst_7 : f32 to vector<64x8xf32>
    %16 = arith.maximumf %14, %15 : vector<64x8xf32>
    %cst_8 = arith.constant 0.000000e+00 : f32
    %17 = vector.broadcast %cst_8 : f32 to vector<10x10x8xf32>
    %c0_9 = arith.constant 0 : index
    %c0_10 = arith.constant 0 : index
    %c0_11 = arith.constant 0 : index
    %18 = vector.load %arg7[%c0_9, %c0_10, %c0_11] : memref<10x10x8xf32, #tpu.memory_space<vmem>>, vector<10x10x8xf32>
    tpu.vector_store %arg7[%c0_9, %c0_10, %c0_11], %17 {strides = array<i32>} : memref<10x10x8xf32, #tpu.memory_space<vmem>>, vector<10x10x8xf32>,
    %19 = vector.shape_cast %16 : vector<64x8xf32> to vector<8x8x8xf32>
    %c1 = arith.constant 1 : index
    %c1_12 = arith.constant 1 : index
    %c0_13 = arith.constant 0 : index
    %20 = vector.load %arg7[%c1, %c1_12, %c0_13] : memref<10x10x8xf32, #tpu.memory_space<vmem>>, vector<8x8x8xf32>
    tpu.vector_store %arg7[%c1, %c1_12, %c0_13], %19 {strides = array<i32>} : memref<10x10x8xf32, #tpu.memory_space<vmem>>, vector<8x8x8xf32>,
    %c0_14 = arith.constant 0 : index
    %c0_15 = arith.constant 0 : index
    %c0_16 = arith.constant 0 : index
    %21 = vector.load %arg7[%c0_14, %c0_15, %c0_16] : memref<10x10x8xf32, #tpu.memory_space<vmem>>, vector<8x8x8xf32>
    %c0_17 = arith.constant 0 : index
    %c1_18 = arith.constant 1 : index
    %c0_19 = arith.constant 0 : index
    %22 = vector.load %arg7[%c0_17, %c1_18, %c0_19] : memref<10x10x8xf32, #tpu.memory_space<vmem>>, vector<8x8x8xf32>
    %c1_20 = arith.constant 1 : index
    %c0_21 = arith.constant 0 : index
    %c0_22 = arith.constant 0 : index
    %23 = vector.load %arg7[%c1_20, %c0_21, %c0_22] : memref<10x10x8xf32, #tpu.memory_space<vmem>>, vector<8x8x8xf32>
    %c1_23 = arith.constant 1 : index
    %c1_24 = arith.constant 1 : index
    %c0_25 = arith.constant 0 : index
    %24 = vector.load %arg7[%c1_23, %c1_24, %c0_25] : memref<10x10x8xf32, #tpu.memory_space<vmem>>, vector<8x8x8xf32>
    %25 = tpu.concatenate %21, %22, %23, %24 in 2 : vector<8x8x8xf32>, vector<8x8x8xf32>, vector<8x8x8xf32>, vector<8x8x8xf32> -> vector<8x8x32xf32>
    %26 = vector.shape_cast %25 : vector<8x8x32xf32> to vector<64x32xf32>
    %c0_26 = arith.constant 0 : index
    %c0_27 = arith.constant 0 : index
    %c0_28 = arith.constant 0 : index
    %c0_29 = arith.constant 0 : index
    %27 = vector.load %arg3[%c0_26, %c0_27, %c0_28, %c0_29] : memref<2x2x32x4xf32, #tpu.memory_space<vmem>>, vector<1x1x32x4xf32>
    %28 = vector.shape_cast %27 : vector<1x1x32x4xf32> to vector<32x4xf32>
    %cst_30 = arith.constant dense<0.000000e+00> : vector<64x4xf32>
    %29 = tpu.matmul %26, %28, %cst_30 {dimension_numbers = #tpu.dot_dimension_numbers<[1], [0], [0], [1], [0, 0, 1, 1], [], []>} : vector<64x32xf32>, vector<32x4xf32>, vector<64x4xf32> -> vector<64x4xf32>
    %c0_31 = arith.constant 0 : index
    %c1_32 = arith.constant 1 : index
    %c0_33 = arith.constant 0 : index
    %30 = vector.load %arg7[%c0_31, %c1_32, %c0_33] : memref<10x10x8xf32, #tpu.memory_space<vmem>>, vector<8x8x8xf32>
    %c0_34 = arith.constant 0 : index
    %c2 = arith.constant 2 : index
    %c0_35 = arith.constant 0 : index
    %31 = vector.load %arg7[%c0_34, %c2, %c0_35] : memref<10x10x8xf32, #tpu.memory_space<vmem>>, vector<8x8x8xf32>
    %c1_36 = arith.constant 1 : index
    %c1_37 = arith.constant 1 : index
    %c0_38 = arith.constant 0 : index
    %32 = vector.load %arg7[%c1_36, %c1_37, %c0_38] : memref<10x10x8xf32, #tpu.memory_space<vmem>>, vector<8x8x8xf32>
    %c1_39 = arith.constant 1 : index
    %c2_40 = arith.constant 2 : index
    %c0_41 = arith.constant 0 : index
    %33 = vector.load %arg7[%c1_39, %c2_40, %c0_41] : memref<10x10x8xf32, #tpu.memory_space<vmem>>, vector<8x8x8xf32>
    %34 = tpu.concatenate %30, %31, %32, %33 in 2 : vector<8x8x8xf32>, vector<8x8x8xf32>, vector<8x8x8xf32>, vector<8x8x8xf32> -> vector<8x8x32xf32>
    %35 = vector.shape_cast %34 : vector<8x8x32xf32> to vector<64x32xf32>
    %c0_42 = arith.constant 0 : index
    %c1_43 = arith.constant 1 : index
    %c0_44 = arith.constant 0 : index
    %c0_45 = arith.constant 0 : index
    %36 = vector.load %arg3[%c0_42, %c1_43, %c0_44, %c0_45] : memref<2x2x32x4xf32, #tpu.memory_space<vmem>>, vector<1x1x32x4xf32>
    %37 = vector.shape_cast %36 : vector<1x1x32x4xf32> to vector<32x4xf32>
    %cst_46 = arith.constant dense<0.000000e+00> : vector<64x4xf32>
    %38 = tpu.matmul %35, %37, %cst_46 {dimension_numbers = #tpu.dot_dimension_numbers<[1], [0], [0], [1], [0, 0, 1, 1], [], []>} : vector<64x32xf32>, vector<32x4xf32>, vector<64x4xf32> -> vector<64x4xf32>
    %c1_47 = arith.constant 1 : index
    %c0_48 = arith.constant 0 : index
    %c0_49 = arith.constant 0 : index
    %39 = vector.load %arg7[%c1_47, %c0_48, %c0_49] : memref<10x10x8xf32, #tpu.memory_space<vmem>>, vector<8x8x8xf32>
    %c1_50 = arith.constant 1 : index
    %c1_51 = arith.constant 1 : index
    %c0_52 = arith.constant 0 : index
    %40 = vector.load %arg7[%c1_50, %c1_51, %c0_52] : memref<10x10x8xf32, #tpu.memory_space<vmem>>, vector<8x8x8xf32>
    %c2_53 = arith.constant 2 : index
    %c0_54 = arith.constant 0 : index
    %c0_55 = arith.constant 0 : index
    %41 = vector.load %arg7[%c2_53, %c0_54, %c0_55] : memref<10x10x8xf32, #tpu.memory_space<vmem>>, vector<8x8x8xf32>
    %c2_56 = arith.constant 2 : index
    %c1_57 = arith.constant 1 : index
    %c0_58 = arith.constant 0 : index
    %42 = vector.load %arg7[%c2_56, %c1_57, %c0_58] : memref<10x10x8xf32, #tpu.memory_space<vmem>>, vector<8x8x8xf32>
    %43 = tpu.concatenate %39, %40, %41, %42 in 2 : vector<8x8x8xf32>, vector<8x8x8xf32>, vector<8x8x8xf32>, vector<8x8x8xf32> -> vector<8x8x32xf32>
    %44 = vector.shape_cast %43 : vector<8x8x32xf32> to vector<64x32xf32>
    %c1_59 = arith.constant 1 : index
    %c0_60 = arith.constant 0 : index
    %c0_61 = arith.constant 0 : index
    %c0_62 = arith.constant 0 : index
    %45 = vector.load %arg3[%c1_59, %c0_60, %c0_61, %c0_62] : memref<2x2x32x4xf32, #tpu.memory_space<vmem>>, vector<1x1x32x4xf32>
    %46 = vector.shape_cast %45 : vector<1x1x32x4xf32> to vector<32x4xf32>
    %cst_63 = arith.constant dense<0.000000e+00> : vector<64x4xf32>
    %47 = tpu.matmul %44, %46, %cst_63 {dimension_numbers = #tpu.dot_dimension_numbers<[1], [0], [0], [1], [0, 0, 1, 1], [], []>} : vector<64x32xf32>, vector<32x4xf32>, vector<64x4xf32> -> vector<64x4xf32>
    %c1_64 = arith.constant 1 : index
    %c1_65 = arith.constant 1 : index
    %c0_66 = arith.constant 0 : index
    %48 = vector.load %arg7[%c1_64, %c1_65, %c0_66] : memref<10x10x8xf32, #tpu.memory_space<vmem>>, vector<8x8x8xf32>
    %c1_67 = arith.constant 1 : index
    %c2_68 = arith.constant 2 : index
    %c0_69 = arith.constant 0 : index
    %49 = vector.load %arg7[%c1_67, %c2_68, %c0_69] : memref<10x10x8xf32, #tpu.memory_space<vmem>>, vector<8x8x8xf32>
    %c2_70 = arith.constant 2 : index
    %c1_71 = arith.constant 1 : index
    %c0_72 = arith.constant 0 : index
    %50 = vector.load %arg7[%c2_70, %c1_71, %c0_72] : memref<10x10x8xf32, #tpu.memory_space<vmem>>, vector<8x8x8xf32>
    %c2_73 = arith.constant 2 : index
    %c2_74 = arith.constant 2 : index
    %c0_75 = arith.constant 0 : index
    %51 = vector.load %arg7[%c2_73, %c2_74, %c0_75] : memref<10x10x8xf32, #tpu.memory_space<vmem>>, vector<8x8x8xf32>
    %52 = tpu.concatenate %48, %49, %50, %51 in 2 : vector<8x8x8xf32>, vector<8x8x8xf32>, vector<8x8x8xf32>, vector<8x8x8xf32> -> vector<8x8x32xf32>
    %53 = vector.shape_cast %52 : vector<8x8x32xf32> to vector<64x32xf32>
    %c1_76 = arith.constant 1 : index
    %c1_77 = arith.constant 1 : index
    %c0_78 = arith.constant 0 : index
    %c0_79 = arith.constant 0 : index
    %54 = vector.load %arg3[%c1_76, %c1_77, %c0_78, %c0_79] : memref<2x2x32x4xf32, #tpu.memory_space<vmem>>, vector<1x1x32x4xf32>
    %55 = vector.shape_cast %54 : vector<1x1x32x4xf32> to vector<32x4xf32>
    %cst_80 = arith.constant dense<0.000000e+00> : vector<64x4xf32>
    %56 = tpu.matmul %53, %55, %cst_80 {dimension_numbers = #tpu.dot_dimension_numbers<[1], [0], [0], [1], [0, 0, 1, 1], [], []>} : vector<64x32xf32>, vector<32x4xf32>, vector<64x4xf32> -> vector<64x4xf32>
    %57 = tpu.concatenate %29, %38, %47, %56 in 1 : vector<64x4xf32>, vector<64x4xf32>, vector<64x4xf32>, vector<64x4xf32> -> vector<64x16xf32>
    %58 = arith.index_cast %arg0 : i32 to index
    %c0_81 = arith.constant 0 : index
    %c0_82 = arith.constant 0 : index
    %59 = vector.load %arg6[%58, %c0_81, %c0_82] : memref<2x64x16xf32, #tpu.memory_space<vmem>>, vector<1x64x16xf32>
    %60 = vector.shape_cast %59 : vector<1x64x16xf32> to vector<64x16xf32>
    %61 = vector.shape_cast %57 : vector<64x16xf32> to vector<1x64x16xf32>
    tpu.vector_store %arg6[%58, %c0_81, %c0_82], %61 {strides = array<i32>} : memref<2x64x16xf32, #tpu.memory_space<vmem>>, vector<1x64x16xf32>,
    %c1_i32 = arith.constant 1 : i32
    %62 = arith.cmpi eq, %arg0, %c1_i32 : i32
    %63 = arith.extui %62 : i1 to i32
    %c0_i32 = arith.constant 0 : i32
    %64 = arith.cmpi ne, %63, %c0_i32 : i32
    scf.if %64 {
      %c0_83 = arith.constant 0 : index
      %c0_84 = arith.constant 0 : index
      %c0_85 = arith.constant 0 : index
      %65 = vector.load %arg6[%c0_83, %c0_84, %c0_85] : memref<2x64x16xf32, #tpu.memory_space<vmem>>, vector<2x64x16xf32>
      %cst_86 = arith.constant dense<0.000000e+00> : vector<64x16xf32>
      %66 = vector.multi_reduction <add>, %65, %cst_86 [0] : vector<2x64x16xf32> to vector<64x16xf32>
      %cst_87 = arith.constant dense<0.000000e+00> : vector<16xf32>
      %67 = vector.multi_reduction <add>, %66, %cst_87 [0] : vector<64x16xf32> to vector<16xf32>
      %68 = vector.shape_cast %67 : vector<16xf32> to vector<1x16xf32>
      %69 = vector.extract_strided_slice %68 {offsets = [0, 0], sizes = [1, 4], strides = [1, 1]} : vector<1x16xf32> to vector<1x4xf32>
      %70 = vector.extract_strided_slice %68 {offsets = [0, 4], sizes = [1, 4], strides = [1, 1]} : vector<1x16xf32> to vector<1x4xf32>
      %71 = arith.addf %69, %70 : vector<1x4xf32>
      %72 = vector.extract_strided_slice %68 {offsets = [0, 8], sizes = [1, 4], strides = [1, 1]} : vector<1x16xf32> to vector<1x4xf32>
      %73 = arith.addf %71, %72 : vector<1x4xf32>
      %74 = vector.extract_strided_slice %68 {offsets = [0, 12], sizes = [1, 4], strides = [1, 1]} : vector<1x16xf32> to vector<1x4xf32>
      %75 = arith.addf %73, %74 : vector<1x4xf32>
      %cst_88 = arith.constant 5.120000e+02 : f32
      %76 = vector.broadcast %cst_88 : f32 to vector<1x4xf32>
      %77 = arith.divf %75, %76 : vector<1x4xf32>
      %78 = tpu.concatenate %77, %77, %77, %77 in 1 : vector<1x4xf32>, vector<1x4xf32>, vector<1x4xf32>, vector<1x4xf32> -> vector<1x16xf32>
      %79 = vector.shape_cast %78 : vector<1x16xf32> to vector<1x1x16xf32>
      %80 = vector.broadcast %79 : vector<1x1x16xf32> to vector<2x64x16xf32>
      %81 = arith.subf %65, %80 : vector<2x64x16xf32>
      %82 = arith.mulf %81, %81 : vector<2x64x16xf32>
      %cst_89 = arith.constant dense<0.000000e+00> : vector<64x16xf32>
      %83 = vector.multi_reduction <add>, %82, %cst_89 [0] : vector<2x64x16xf32> to vector<64x16xf32>
      %cst_90 = arith.constant dense<0.000000e+00> : vector<16xf32>
      %84 = vector.multi_reduction <add>, %83, %cst_90 [0] : vector<64x16xf32> to vector<16xf32>
      %85 = vector.shape_cast %84 : vector<16xf32> to vector<1x16xf32>
      %86 = vector.extract_strided_slice %85 {offsets = [0, 0], sizes = [1, 4], strides = [1, 1]} : vector<1x16xf32> to vector<1x4xf32>
      %87 = vector.extract_strided_slice %85 {offsets = [0, 4], sizes = [1, 4], strides = [1, 1]} : vector<1x16xf32> to vector<1x4xf32>
      %88 = arith.addf %86, %87 : vector<1x4xf32>
      %89 = vector.extract_strided_slice %85 {offsets = [0, 8], sizes = [1, 4], strides = [1, 1]} : vector<1x16xf32> to vector<1x4xf32>
      %90 = arith.addf %88, %89 : vector<1x4xf32>
      %91 = vector.extract_strided_slice %85 {offsets = [0, 12], sizes = [1, 4], strides = [1, 1]} : vector<1x16xf32> to vector<1x4xf32>
      %92 = arith.addf %90, %91 : vector<1x4xf32>
      %cst_91 = arith.constant 5.120000e+02 : f32
      %93 = vector.broadcast %cst_91 : f32 to vector<1x4xf32>
      %94 = arith.divf %92, %93 : vector<1x4xf32>
      %c0_92 = arith.constant 0 : index
      %c0_93 = arith.constant 0 : index
      %95 = vector.load %arg4[%c0_92, %c0_93] : memref<1x4xf32, #tpu.memory_space<vmem>>, vector<1x4xf32>
      %cst_94 = arith.constant 9.99999974E-6 : f32
      %96 = vector.broadcast %cst_94 : f32 to vector<1x4xf32>
      %97 = arith.addf %94, %96 : vector<1x4xf32>
      %98 = math.rsqrt %97 : vector<1x4xf32>
      %99 = arith.mulf %95, %98 : vector<1x4xf32>
      %100 = tpu.concatenate %99, %99, %99, %99 in 1 : vector<1x4xf32>, vector<1x4xf32>, vector<1x4xf32>, vector<1x4xf32> -> vector<1x16xf32>
      %c0_95 = arith.constant 0 : index
      %c0_96 = arith.constant 0 : index
      %101 = vector.load %arg5[%c0_95, %c0_96] : memref<1x4xf32, #tpu.memory_space<vmem>>, vector<1x4xf32>
      %102 = tpu.concatenate %101, %101, %101, %101 in 1 : vector<1x4xf32>, vector<1x4xf32>, vector<1x4xf32>, vector<1x4xf32> -> vector<1x16xf32>
      %103 = vector.shape_cast %100 : vector<1x16xf32> to vector<1x1x16xf32>
      %104 = vector.broadcast %103 : vector<1x1x16xf32> to vector<2x64x16xf32>
      %105 = arith.mulf %81, %104 : vector<2x64x16xf32>
      %106 = vector.shape_cast %102 : vector<1x16xf32> to vector<1x1x16xf32>
      %107 = vector.broadcast %106 : vector<1x1x16xf32> to vector<2x64x16xf32>
      %108 = arith.addf %105, %107 : vector<2x64x16xf32>
      %c0_97 = arith.constant 0 : index
      %c0_98 = arith.constant 0 : index
      %c0_99 = arith.constant 0 : index
      %109 = vector.load %arg6[%c0_97, %c0_98, %c0_99] : memref<2x64x16xf32, #tpu.memory_space<vmem>>, vector<2x64x16xf32>
      tpu.vector_store %arg6[%c0_97, %c0_98, %c0_99], %108 {strides = array<i32>} : memref<2x64x16xf32, #tpu.memory_space<vmem>>, vector<2x64x16xf32>,
    } else {
    }
    return
  }
  func.func @transform_0(%arg0: i32) -> (i32, i32, i32, i32) {
    %c0_i32 = arith.constant 0 : i32
    %c0_i32_0 = arith.constant 0 : i32
    %c0_i32_1 = arith.constant 0 : i32
    %c0_i32_2 = arith.constant 0 : i32
    return %arg0, %c0_i32, %c0_i32_0, %c0_i32_1 : i32, i32, i32, i32
  }
  func.func @transform_1(%arg0: i32) -> (i32, i32) {
    %c0_i32 = arith.constant 0 : i32
    %c0_i32_0 = arith.constant 0 : i32
    %c0_i32_1 = arith.constant 0 : i32
    return %c0_i32, %c0_i32_0 : i32, i32
  }
  func.func @transform_2(%arg0: i32) -> (i32, i32, i32, i32) {
    %c0_i32 = arith.constant 0 : i32
    %c0_i32_0 = arith.constant 0 : i32
    %c0_i32_1 = arith.constant 0 : i32
    %c0_i32_2 = arith.constant 0 : i32
    %c0_i32_3 = arith.constant 0 : i32
    return %c0_i32, %c0_i32_0, %c0_i32_1, %c0_i32_2 : i32, i32, i32, i32
  }
  func.func @transform_3(%arg0: i32) -> (i32, i32) {
    %c0_i32 = arith.constant 0 : i32
    %c0_i32_0 = arith.constant 0 : i32
    %c0_i32_1 = arith.constant 0 : i32
    return %c0_i32, %c0_i32_0 : i32, i32
  }
  func.func @transform_4(%arg0: i32) -> (i32, i32) {
    %c0_i32 = arith.constant 0 : i32
    %c0_i32_0 = arith.constant 0 : i32
    %c0_i32_1 = arith.constant 0 : i32
    return %c0_i32, %c0_i32_0 : i32, i32
  }
  func.func @transform_5(%arg0: i32) -> (i32, i32, i32) {
    %c0_i32 = arith.constant 0 : i32
    %c0_i32_0 = arith.constant 0 : i32
    %c0_i32_1 = arith.constant 0 : i32
    %c0_i32_2 = arith.constant 0 : i32
    return %c0_i32, %c0_i32_0, %c0_i32_1 : i32, i32, i32
  }
}

</mosaic_0001>

<bundles_post_ra>
// kernel: unet_innermost_block.1
= control target key start
LH: loop header
LB: loop body
LE: loop exit
PB: predicated region body
PF: predicated region fallthrough
CT: control target
= control target key end

     0   :  { %s2424_s18 = smov 0   ;;  %s3580_s0 = inlined_call_operand.vmem [shape: f32[2,9,9,16], index: 0, kind: input, shape index: {}]   ;;  %s3581_s1 = inlined_call_operand.vmem [shape: f32[64,8], index: 1, kind: input, shape index: {}]   ;;  %s3582_s2 = inlined_call_operand.vmem [shape: f32[2,2,32,4], index: 2, kind: input, shape index: {}]   ;;  %s3583_s3 = inlined_call_operand.vmem [shape: f32[1,4], index: 3, kind: input, shape index: {}]   ;;  %s3584_s4 = inlined_call_operand.vmem [shape: f32[1,4], index: 4, kind: input, shape index: {}]   ;;  %s3585_s5 = inlined_call_operand.vmem [shape: f32[2,64,16], index: 5, kind: output, shape index: {}]  }
   0x1 LB: > { %s2430_s19 = sadd.s32 4294967295, %s2378_s18   ;;  %p2109_p0 = scmp.ge.s32.totalorder %s2378_s18, 1  ;;  %s2378_s18 = sphi %s2424_s18, %s15_s18  }
   0x2   : > { %p182_p1 = scmp.lt.s32.totalorder %s2378_s18, 3 }
   0x4   : > { %p183_p2 = pnand %p2109_p0, %p182_p1 }
   0x5   : > { %p205_p3 = scmp.lt.s32.totalorder (!%p183_p2), %s2430_s19, 1  ;;  %s2380_s12 = smov (!%p183_p2), 32  }
   0x6   : > { %186 = sbr.rel (%p183_p2) target bundleno = 1582 (0x62e), region = 40  ;;  %s2381_s13 = smov (!%p183_p2), 16  }
   0x7   : > { %s2382_s20 = smov (!%p183_p2), 48   ;;  %s2384_s21 = smov (!%p183_p2), 8  }
   0x8   : > { %s2385_s22 = smov (!%p183_p2), 24   ;;  %s2386_s8 = smov (!%p183_p2), 4  }
   0x9   : > { %s2387_s9 = smov (!%p183_p2), 12   ;;  %p2164_p4 = scmp.ne.s32.totalorder (!%p183_p2), %s2430_s19, 1 }
   0xb   : > { %v434_v0 = vld [vmem:[%s3581_s1 + $0x38] sm:$0xff]  ;;  %v433_v1 = vld [vmem:[%s3581_s1 + $0x30] sm:$0xff]  ;;  %s206_s24 = scalar_select %p205_p3, %s2430_s19, 1  ;;  %v432_v2 = vld [vmem:[%s3581_s1 + $0x28] sm:$0xff]  ;;  %vm298_vm0 = vcmask 1046528  }
   0xc   : > { %2231 = vmatprep.subr.mxu0 %v434_v0  ;;  %v431_v3 = vld [vmem:[%s3581_s1 + $0x20] sm:$0xff]  ;;  %v430_v4 = vld [vmem:[%s3581_s1 + $0x18] sm:$0xff]  ;;  %v429_v5 = vld [vmem:[%s3581_s1 + $0x10] sm:$0xff]  ;;  %s2389_s26 = smov (!%p2164_p4), 116   ;;  %s2391_s28 = smov (!%p2164_p4), 8  }
   0xd   : > { %2232 = vmatpush3.msra.mxu0 %v434_v0  ;;  %s2347_s27 = smul.u32 144, %s206_s24  ;;  %v428_v44 = vld [vmem:[%s3581_s1 + $0x8] sm:$0xff]  ;;  %v427_v48 = vld [vmem:[%s3581_s1] sm:$0xff]  ;;  %s2393_s29 = smov (!%p2164_p4), 12  }
   0xe   : > { %2233 = vmatprep.subr.mxu0 %v433_v1 }
   0xf   : > { %2234 = vmatpush3.msra.mxu0 %v433_v1  ;;  %s2451_s7 = scalar_lea.vmem %s3580_s0, %s2347_s27  ;;  %s2390_s27 = smov (!%p2164_p4), 120  }
  0x10   : > { %2235 = vmatprep.subr.mxu0 %v432_v2  ;;  %v212_v6 = vld [vmem:[%s2451_s7 + $0x10] sm:$0xff]  ;;  %v210_v7 = vld [vmem:[%s2451_s7] sm:$0xff]  ;;  %v211_v8 = vld [vmem:[%s2451_s7 + $0x8] sm:$0x1] }
  0x11   : > { %2236 = vmatpush3.msra.mxu0 %v432_v2  ;;  %vm230_vm1 = vcmp.ge.f32.partialorder %v212_v6, 0.0  ;;  %v248_v9 = vmul.f32 0.2, %v212_v6  ;;  %vm228_vm2 = vcmp.ge.f32.partialorder %v210_v7, 0.0  ;;  %vm229_vm3 = vcmp.ge.f32.partialorder %v211_v8, 0.0  ;;  %v214_v10 = vld [vmem:[%s2451_s7 + $0x20] sm:$0xff] }
  0x12   : > { %2237 = vmatprep.subr.mxu0 %v431_v3  ;;  %v246_v11 = vmul.f32 0.2, %v210_v7  ;;  %v247_v12 = vmul.f32 0.2, %v211_v8  ;;  %vm232_vm4 = vcmp.ge.f32.partialorder %v214_v10, 0.0  ;;  %v216_v13 = vld [vmem:[%s2451_s7 + $0x30] sm:$0xff] }
  0x13   : > { %2238 = vmatpush3.msra.mxu0 %v431_v3  ;;  %v2464_v14 = vsel %vm230_vm1, %v212_v6, %v248_v9  ;;  %v250_v15 = vmul.f32 0.2, %v214_v10  ;;  %v213_v16 = vld [vmem:[%s2451_s7 + $0x18] sm:$0x1]  ;;  %v215_v17 = vld [vmem:[%s2451_s7 + $0x28] sm:$0x1] }
  0x14   : > { %2239 = vmatprep.subr.mxu0 %v430_v4  ;;  %348 = vrot.lane.b32.xlu1 %v2464_v14, %s2380_s12  ;;  %v302_v18 = vrot.slane %v2464_v14, 1  ;;  %v2472_v19 = vsel %vm228_vm2, %v210_v7, %v246_v11  ;;  %v265_v20 = vsel %vm229_vm3, %v211_v8, %v247_v12  ;;  %vm231_vm5 = vcmp.ge.f32.partialorder %v213_v16, 0.0  ;;  %v217_v21 = vld [vmem:[%s2451_s7 + $0x38] sm:$0x1]  ;;  %v218_v28 = vld [vmem:[%s2451_s7 + $0x40] sm:$0xff]  ;;  %v220_v43 = vld [vmem:[%s2451_s7 + $0x50] sm:$0xff] }
  0x15   : > { %2240 = vmatpush3.msra.mxu0 %v430_v4  ;;  %v299_v22 = vrot.slane %v2472_v19, 1  ;;  %v300_v23 = vrot.slane %v265_v20, 1  ;;  %v2478_v24 = vsel %vm232_vm4, %v214_v10, %v250_v15  ;;  %v249_v25 = vmul.f32 0.2, %v213_v16  ;;  %v219_v32 = vld [vmem:[%s2451_s7 + $0x48] sm:$0x1] }
  0x16   : > { %2241 = vmatprep.subr.mxu0 %v429_v5  ;;  %v305_v26 = vrot.slane %v2478_v24, 1  ;;  %vm233_vm6 = vcmp.ge.f32.partialorder %v215_v17, 0.0  ;;  %v251_v27 = vmul.f32 0.2, %v215_v17  ;;  %vm234_vm7 = vcmp.ge.f32.partialorder %v216_v13, 0.0  ;;  %v222_v58 = vld [vmem:[%s2451_s7 + $0x60] sm:$0xff] }
  0x17   : > { %2242 = vmatpush3.msra.mxu0 %v429_v5  ;;  %v301_v29 = vsel %vm298_vm0, %v299_v22, %v300_v23  ;;  %v267_v30 = vsel %vm231_vm5, %v213_v16, %v249_v25  ;;  %vm235_vm8 = vcmp.ge.f32.partialorder %v217_v21, 0.0  ;;  %v252_v31 = vmul.f32 0.2, %v216_v13  ;;  %v221_v47 = vld [vmem:[%s2451_s7 + $0x58] sm:$0x1]  ;;  %v224_v1 = vld [vmem:[%s2451_s7 + $0x70] sm:$0xff] }
  0x18   : > { %323 = vrot.lane.b32.xlu0 %v301_v29, %s2381_s13  ;;  %350 = vrot.lane.b32.xlu1 %v2478_v24, %s2380_s12  ;;  %v303_v33 = vrot.slane %v267_v30, 1  ;;  %v269_v34 = vsel %vm233_vm6, %v215_v17, %v251_v27  ;;  %v253_v35 = vmul.f32 0.2, %v217_v21  ;;  %v254_v38 = vmul.f32 0.2, %v218_v28  ;;  %v226_v12 = vld [vmem:[%s2451_s7 + $0x80] sm:$0xff] }
  0x19   : > { %v306_v36 = vrot.slane %v269_v34, 1  ;;  %v2487_v37 = vsel %vm234_vm7, %v216_v13, %v252_v31  ;;  %v255_v42 = vmul.f32 0.2, %v219_v32  ;;  %vm236_vm9 = vcmp.ge.f32.partialorder %v218_v28, 0.0  ;;  %2243 = vmatprep.subr.mxu0 %v428_v44  ;;  %v223_v59 = vld [vmem:[%s2451_s7 + $0x68] sm:$0x1] }
  0x1a   : > { %v304_v39 = vsel %vm298_vm0, %v302_v18, %v303_v33  ;;  %v271_v40 = vsel %vm235_vm8, %v217_v21, %v253_v35  ;;  %v308_v41 = vrot.slane %v2487_v37, 1  ;;  %vm237_vm10 = vcmp.ge.f32.partialorder %v219_v32, 0.0  ;;  %2244 = vmatpush3.msra.mxu0 %v428_v44  ;;  %v225_v2 = vld [vmem:[%s2451_s7 + $0x78] sm:$0x1]  ;;  %v227_v13 = vld [vmem:[%s2451_s7 + $0x88] sm:$0x1] }
  0x1b   : > { %v307_v45 = vsel %vm298_vm0, %v305_v26, %v306_v36  ;;  %v309_v46 = vrot.slane %v271_v40, 1  ;;  %v2503_v50 = vsel %vm236_vm9, %v218_v28, %v254_v38  ;;  %v273_v51 = vsel %vm237_vm10, %v219_v32, %v255_v42  ;;  %2245 = vmatprep.subr.mxu0 %v427_v48 }
  0x1c   : > { %325 = vrot.lane.b32.xlu0 %v304_v39, %s2381_s13  ;;  %378 = vrot.lane.b32.xlu1 %v307_v45, %s2382_s20  ;;  %v256_v52 = vmul.f32 0.2, %v220_v43  ;;  %v257_v53 = vmul.f32 0.2, %v221_v47  ;;  %vm238_vm11 = vcmp.ge.f32.partialorder %v220_v43, 0.0  ;;  %vm239_vm12 = vcmp.ge.f32.partialorder %v221_v47, 0.0 }
  0x1d   : > { %v310_v49 = vsel %vm298_vm0, %v308_v41, %v309_v46  ;;  %2246 = vmatpush3.msra.mxu0 %v427_v48  ;;  %v311_v54 = vrot.slane %v2503_v50, 1  ;;  %v312_v55 = vrot.slane %v273_v51, 1  ;;  %v258_v63 = vmul.f32 0.2, %v222_v58 }
  0x1e   : > { %v2508_v56 = vsel %vm238_vm11, %v220_v43, %v256_v52  ;;  %v275_v57 = vsel %vm239_vm12, %v221_v47, %v257_v53  ;;  %v259_v0 = vmul.f32 0.2, %v223_v59  ;;  %vm240_vm13 = vcmp.ge.f32.partialorder %v222_v58, 0.0 }
  0x1f   : > { %v313_v60 = vsel %vm298_vm0, %v311_v54, %v312_v55  ;;  %v314_v61 = vrot.slane %v2508_v56, 1  ;;  %v315_v62 = vrot.slane %v275_v57, 1  ;;  %vm241_vm14 = vcmp.ge.f32.partialorder %v223_v59, 0.0 }
  0x20   : > { %376 = vrot.lane.b32.xlu0 %v304_v39, %s2382_s20  ;;  %329 = vrot.lane.b32.xlu1 %v310_v49, %s2381_s13  ;;  %v2523_v4 = vsel %vm240_vm13, %v222_v58, %v258_v63  ;;  %v277_v5 = vsel %vm241_vm14, %v223_v59, %v259_v0  ;;  %v260_v6 = vmul.f32 0.2, %v224_v1  ;;  %v261_v7 = vmul.f32 0.2, %v225_v2 }
  0x21   : > { %v316_v3 = vsel %vm298_vm0, %v314_v61, %v315_v62  ;;  %vm242_vm15 = vcmp.ge.f32.partialorder %v224_v1, 0.0  ;;  %vm243_vm1 = vcmp.ge.f32.partialorder %v225_v2, 0.0  ;;  %v317_v8 = vrot.slane %v2523_v4, 1 }
  0x22   : > { %v318_v9 = vrot.slane %v277_v5, 1  ;;  %v2528_v10 = vsel %vm242_vm15, %v224_v1, %v260_v6  ;;  %v279_v11 = vsel %vm243_vm1, %v225_v2, %v261_v7  ;;  %v262_v18 = vmul.f32 0.2, %v226_v12 }
  0x23   : > { %v320_v16 = vrot.slane %v2528_v10, 1  ;;  %v321_v17 = vrot.slane %v279_v11, 1  ;;  %vm244_vm2 = vcmp.ge.f32.partialorder %v226_v12, 0.0  ;;  %v263_v20 = vmul.f32 0.2, %v227_v13 }
  0x24   : > { %327 = vrot.lane.b32.xlu0 %v307_v45, %s2381_s13  ;;  %354 = vrot.lane.b32.xlu1 %v2503_v50, %s2380_s12  ;;  %v319_v15 = vsel %vm298_vm0, %v317_v8, %v318_v9  ;;  %vm245_vm3 = vcmp.ge.f32.partialorder %v227_v13, 0.0  ;;  %v280_v22 = vsel %vm244_vm2, %v226_v12, %v262_v18  ;;  %vm573_vm4 = vcmask 64512  }
  0x25   : > { %v322_v21 = vsel %vm298_vm0, %v320_v16, %v321_v17  ;;  %v281_v23 = vsel %vm245_vm3, %v227_v13, %v263_v20  ;;  %v373_v25 = vrot.slane %v280_v22, 1  ;;  %vm575_vm5 = vcmask 58368  }
  0x26   : > { %v374_v26 = vrot.slane %v281_v23, 1  ;;  %v2383_v27 = vmov 0.0   ;;  %vm409_vm6 = vcmask 261120   ;;  %vm418_vm7 = vcmask 392192  }
  0x27   : > { %574 = vst.msk [vmem:[#allocation2] sm:$0xff] %vm573_vm4, %v2383_v27  ;;  %577 = vst.msk [vmem:[#allocation2 + $0x10] sm:$0xff] %vm573_vm4, %v2383_v27  ;;  %vm435_vm8 = vcmask 523264   ;;  %vm748_vm9 = vcmask 195584   ;;  %vm1757_vm10 = vcmask 31744   ;;  %vm1774_vm11 = vcmask 97280  }
  0x28   : > { %352 = vrot.lane.b32.xlu0 %v2487_v37, %s2380_s12  ;;  %382 = vrot.lane.b32.xlu1 %v313_v60, %s2382_s20  ;;  %576 = vst.msk [vmem:[#allocation2 + $0x8] sm:$0x3] %vm575_vm5, %v2383_v27  ;;  %578 = vst.msk [vmem:[#allocation2 + $0x18] sm:$0x3] %vm575_vm5, %v2383_v27  ;;  %v375_v28 = vsel %vm298_vm0, %v373_v25, %v374_v26  ;;  %vm400_vm0 = vcmask 130048  }
  0x29   : > { %579 = vst.msk [vmem:[#allocation2 + $0x20] sm:$0xff] %vm573_vm4, %v2383_v27  ;;  %581 = vst.msk [vmem:[#allocation2 + $0x30] sm:$0xff] %vm573_vm4, %v2383_v27 }
  0x2a   : > { %580 = vst.msk [vmem:[#allocation2 + $0x28] sm:$0x3] %vm575_vm5, %v2383_v27  ;;  %582 = vst.msk [vmem:[#allocation2 + $0x38] sm:$0x3] %vm575_vm5, %v2383_v27 }
  0x2b   : > { %583 = vst.msk [vmem:[#allocation2 + $0x40] sm:$0xff] %vm573_vm4, %v2383_v27  ;;  %585 = vst.msk [vmem:[#allocation2 + $0x50] sm:$0xff] %vm573_vm4, %v2383_v27 }
  0x2c   : > { %380 = vrot.lane.b32.xlu0 %v310_v49, %s2382_s20  ;;  %333 = vrot.lane.b32.xlu1 %v316_v3, %s2381_s13  ;;  %584 = vst.msk [vmem:[#allocation2 + $0x48] sm:$0x3] %vm575_vm5, %v2383_v27  ;;  %586 = vst.msk [vmem:[#allocation2 + $0x58] sm:$0x3] %vm575_vm5, %v2383_v27 }
  0x2d   : > { %587 = vst.msk [vmem:[#allocation2 + $0x60] sm:$0xff] %vm573_vm4, %v2383_v27  ;;  %589 = vst.msk [vmem:[#allocation2 + $0x70] sm:$0xff] %vm573_vm4, %v2383_v27 }
  0x2e   : > { %588 = vst.msk [vmem:[#allocation2 + $0x68] sm:$0x3] %vm575_vm5, %v2383_v27  ;;  %590 = vst.msk [vmem:[#allocation2 + $0x78] sm:$0x3] %vm575_vm5, %v2383_v27 }
  0x2f   : > { %591 = vst.msk [vmem:[#allocation2 + $0x80] sm:$0xff] %vm573_vm4, %v2383_v27  ;;  %593 = vst.msk [vmem:[#allocation2 + $0x90] sm:$0xff] %vm573_vm4, %v2383_v27  ;;  %v2570_v29 = vld [vmem:[#allocation2 + $0x1] sm:$0xff] }
  0x30   : > { %331 = vrot.lane.b32.xlu0 %v313_v60, %s2381_s13  ;;  %358 = vrot.lane.b32.xlu1 %v2523_v4, %s2380_s12  ;;  %592 = vst.msk [vmem:[#allocation2 + $0x88] sm:$0x3] %vm575_vm5, %v2383_v27  ;;  %594 = vst.msk [vmem:[#allocation2 + $0x98] sm:$0x3] %vm575_vm5, %v2383_v27  ;;  %v890_v30 = vld [vmem:[#allocation2 + $0x2] sm:$0xff] }
  0x34   : > { %356 = vrot.lane.b32.xlu0 %v2508_v56, %s2380_s12  ;;  %386 = vrot.lane.b32.xlu1 %v319_v15, %s2382_s20 }
  0x38   : > { %384 = vrot.lane.b32.xlu0 %v316_v3, %s2382_s20  ;;  %337 = vrot.lane.b32.xlu1 %v322_v21, %s2381_s13 }
  0x3c   : > { %335 = vrot.lane.b32.xlu0 %v319_v15, %s2381_s13  ;;  %362 = vrot.lane.b32.xlu1 %v280_v22, %s2380_s12  ;;  %v1160_v15 = vld [vmem:[#allocation2 + $0x90] sm:$0xff] }
  0x40   : > { %360 = vrot.lane.b32.xlu0 %v2528_v10, %s2380_s12  ;;  %390 = vrot.lane.b32.xlu1 %v375_v28, %s2382_s20  ;;  %v760_v28 = vld [vmem:[%s3582_s2 + $0x18] sm:$0xff] }
  0x41   : > { %2259 = vmatprep.subr.mxu1 %v760_v28 }
  0x42   : > { %2260 = vmatpush3.msra.mxu1 %v760_v28  ;;  %v2130_v28 = vld [vmem:[%s3582_s2 + $0x38] sm:$0xff] }
  0x44   : > { %388 = vrot.lane.b32.xlu0 %v322_v21, %s2382_s20 }
  0x48   : > { %644 = vrot.lane.b32.xlu0 %v2570_v29, %s2384_s21 }
  0x4c   : > { %914 = vrot.lane.b32.xlu0 %v890_v30, %s2384_s21  ;;  %v759_v30 = vld [vmem:[%s3582_s2 + $0x10] sm:$0xff] }
  0x4d   : > { %2261 = vmatprep.subr.mxu1 %v759_v30 }
  0x4e   : > { %2262 = vmatpush3.msra.mxu1 %v759_v30 }
  0x50   : > { %1215 = vrot.lane.b32.xlu0 %v1160_v15, %s2381_s13 }
  0x86   : > { %v349_v31 = vpop.permute.xlu1 %348 }
  0x8a   : > { %v324_v32 = vpop.permute.xlu0 %323  ;;  %v351_v33 = vpop.permute.xlu1 %350 }
  0x8b   : > { %v401_v36 = vsel %vm400_vm0, %v2472_v19, %v324_v32  ;;  %v757_v32 = vld [vmem:[%s3582_s2] sm:$0xff] }
  0x8c   : > { %v410_v41 = vsel %vm409_vm6, %v401_v36, %v349_v31  ;;  %v758_v31 = vld [vmem:[%s3582_s2 + $0x8] sm:$0xff] }
  0x8d   : > { %2263 = vmatprep.subr.mxu1 %v758_v31 }
  0x8e   : > { %v326_v34 = vpop.permute.xlu0 %325  ;;  %v379_v35 = vpop.permute.xlu1 %378  ;;  %2264 = vmatpush3.msra.mxu1 %v758_v31 }
  0x8f   : > { %v402_v38 = vsel %vm400_vm0, %v2464_v14, %v326_v34  ;;  %2265 = vmatprep.subr.mxu1 %v757_v32 }
  0x90   : > { %v411_v39 = vsel %vm409_vm6, %v402_v38, %v351_v33  ;;  %2266 = vmatpush3.msra.mxu1 %v757_v32 }
  0x91   : > { %v420_v44 = vsel %vm418_vm7, %v411_v39, %v379_v35  ;;  %2279 = vmatprep.subr.mxu1 %v2130_v28 }
  0x92   : > { %v377_v40 = vpop.permute.xlu0 %376  ;;  %v330_v42 = vpop.permute.xlu1 %329 }
  0x93   : > { %v419_v43 = vsel %vm418_vm7, %v410_v41, %v377_v40  ;;  %v404_v14 = vsel %vm400_vm0, %v2487_v37, %v330_v42 }
  0x94   : > { %2247 = vmatprep.mubr.msk.f32.mxu0 %vm435_vm8, %v419_v43 }
  0x95   : > { %2248 = vmatmul.mubr.msk.f32.vlgmr.msra.gmra.mxu0 %vm435_vm8, %v420_v44 }
  0x96   : > { %v328_v19 = vpop.permute.xlu0 %327  ;;  %v355_v45 = vpop.permute.xlu1 %354 }
  0x97   : > { %v403_v46 = vsel %vm400_vm0, %v2478_v24, %v328_v19  ;;  %v413_v49 = vsel %vm409_vm6, %v404_v14, %v355_v45 }
  0x9a   : > { %v353_v47 = vpop.permute.xlu0 %352  ;;  %v383_v48 = vpop.permute.xlu1 %382 }
  0x9b   : > { %v412_v51 = vsel %vm409_vm6, %v403_v46, %v353_v47  ;;  %v422_v53 = vsel %vm418_vm7, %v413_v49, %v383_v48  ;;  %v2142_v47 = vld [vmem:[%s3582_s2 + $0x58] sm:$0xff]  ;;  %v2141_v48 = vld [vmem:[%s3582_s2 + $0x50] sm:$0xff] }
  0x9c   : > { %2299 = vmatprep.subr.mxu0 %v2142_v47 }
  0x9d   : > { %2300 = vmatpush3.msra.mxu0 %v2142_v47 }
  0x9e   : > { %v381_v52 = vpop.permute.xlu0 %380  ;;  %v334_v54 = vpop.permute.xlu1 %333  ;;  %2301 = vmatprep.subr.mxu0 %v2141_v48 }
  0x9f   : > { %v421_v55 = vsel %vm418_vm7, %v412_v51, %v381_v52  ;;  %v406_v24 = vsel %vm400_vm0, %v2508_v56, %v334_v54  ;;  %v2140_v51 = vld [vmem:[%s3582_s2 + $0x48] sm:$0xff]  ;;  %2302 = vmatpush3.msra.mxu0 %v2141_v48  ;;  %v2139_v52 = vld [vmem:[%s3582_s2 + $0x40] sm:$0xff] }
  0xa0   : > { %2250 = vmatprep.mubr.msk.f32.mxu0 %vm435_vm8, %v421_v55  ;;  %2303 = vmatprep.subr.mxu0 %v2140_v51  ;;  %v2127_v48 = vld [vmem:[%s3582_s2 + $0x20] sm:$0xff] }
  0xa1   : > { %2251 = vmatmul.mubr.msk.f32.gmra.mxu0 %vm435_vm8, %v422_v53 }
  0xa2   : > { %v332_v37 = vpop.permute.xlu0 %331  ;;  %v359_v57 = vpop.permute.xlu1 %358  ;;  %2304 = vmatpush3.msra.mxu0 %v2140_v51 }
  0xa3   : > { %v405_v58 = vsel %vm400_vm0, %v2503_v50, %v332_v37  ;;  %v415_v61 = vsel %vm409_vm6, %v406_v24, %v359_v57  ;;  %2305 = vmatprep.subr.mxu0 %v2139_v52 }
  0xa4   : > { %2306 = vmatpush3.msra.mxu0 %v2139_v52 }
  0xa6   : > { %v357_v59 = vpop.permute.xlu0 %356  ;;  %v387_v60 = vpop.permute.xlu1 %386 }
  0xa7   : > { %v414_v62 = vsel %vm409_vm6, %v405_v58, %v357_v59  ;;  %v424_v0 = vsel %vm418_vm7, %v415_v61, %v387_v60 }
  0xaa   : > { %v385_v63 = vpop.permute.xlu0 %384  ;;  %v338_v1 = vpop.permute.xlu1 %337 }
  0xab   : > { %v423_v2 = vsel %vm418_vm7, %v414_v62, %v385_v63  ;;  %v408_v50 = vsel %vm400_vm0, %v2528_v10, %v338_v1  ;;  %v2616_v10 = vld [vmem:[#allocation2 + $0x91] sm:$0xff] }
  0xac   : > { %2253 = vmatprep.mubr.msk.f32.mxu0 %vm435_vm8, %v423_v2  ;;  %1247 = vrot.lane.b32.xlu0 %v2616_v10, %s2385_s22 }
  0xad   : > { %2254 = vmatmul.mubr.msk.f32.gmra.mxu0 %vm435_vm8, %v424_v0 }
  0xae   : > { %v336_v56 = vpop.permute.xlu0 %335  ;;  %v363_v3 = vpop.permute.xlu1 %362 }
  0xaf   : > { %v407_v5 = vsel %vm400_vm0, %v2523_v4, %v336_v56  ;;  %v417_v7 = vsel %vm409_vm6, %v408_v50, %v363_v3 }
  0xb2   : > { %v361_v6 = vpop.permute.xlu0 %360  ;;  %v391_v8 = vpop.permute.xlu1 %390 }
  0xb3   : > { %v416_v9 = vsel %vm409_vm6, %v407_v5, %v361_v6  ;;  %v426_v12 = vsel %vm418_vm7, %v417_v7, %v391_v8 }
  0xb6   : > { %v389_v11 = vpop.permute.xlu0 %388 }
  0xb7   : > { %v425_v13 = vsel %vm418_vm7, %v416_v9, %v389_v11  ;;  %v604_v11 = vld [vmem:[#allocation2] sm:$0xff] }
  0xb8   : > { %2256 = vmatprep.mubr.msk.f32.mxu0 %vm435_vm8, %v425_v13 }
  0xb9   : > { %2257 = vmatmul.mubr.msk.f32.gmra.mxu0 %vm435_vm8, %v426_v12 }
  0xba   : > { %v645_v57 = vpop.permute.xlu0 %644 }
  0xbe   : > { %v2766_v24 = vpop.permute.xlu0 %914 }
  0xc2   : > { %v2774_v59 = vpop.permute.xlu0 %1215 }
 0x11e   : > { %v2784_v62 = vpop.permute.xlu0 %1247 }
 0x155   : > { %v2249_v4 = vpop.f32.mrf.mxu0 }
 0x156   : > { %v566_v16 = vmax.f32 %v2249_v4, 0.0 }
 0x157   : > { %v526_v17 = vpop.f32.mrf.mxu0 }
 0x158   : > { %597 = vst.msk [vmem:[#allocation2 + $0x21] sm:$0xff] %vm573_vm4, %v566_v16  ;;  %v565_v18 = vmax.f32 %v526_v17, 0.0  ;;  %v732_v16 = vsel %vm573_vm4, %v604_v11, %v645_v57 }
 0x15a   : > { %596 = vst.msk [vmem:[#allocation2 + $0x11] sm:$0xff] %vm573_vm4, %v565_v18 }
 0x15f   : > { %v2622_v20 = vld [vmem:[#allocation2 + $0x20] sm:$0xff] }
 0x160   : > { %v2624_v21 = vld [vmem:[#allocation2 + $0x21] sm:$0xff]  ;;  %678 = vrot.lane.b32.xlu1 %v2622_v20, %s2381_s13 }
 0x161   : > { %648 = vrot.lane.b32.xlu0 %v2624_v21, %s2384_s21  ;;  %v2252_v22 = vpop.f32.mrf.mxu0  ;;  %v2630_v25 = vld [vmem:[#allocation2 + $0x22] sm:$0xff]  ;;  %v2664_v38 = vld [vmem:[#allocation2 + $0x10] sm:$0xff] }
 0x162   : > { %v568_v23 = vmax.f32 %v2252_v22, 0.0  ;;  %v2670_v39 = vld [vmem:[#allocation2 + $0x11] sm:$0xff] }
 0x163   : > { %v536_v26 = vpop.f32.mrf.mxu0  ;;  %v891_v42 = vld [vmem:[#allocation2 + $0x12] sm:$0xff] }
 0x164   : > { %710 = vrot.lane.b32.xlu1 %v2624_v21, %s2385_s22  ;;  %599 = vst.msk [vmem:[#allocation2 + $0x41] sm:$0xff] %vm573_vm4, %v568_v23  ;;  %v567_v27 = vmax.f32 %v536_v26, 0.0 }
 0x165   : > { %918 = vrot.lane.b32.xlu0 %v2630_v25, %s2384_s21 }
 0x166   : > { %598 = vst.msk [vmem:[#allocation2 + $0x31] sm:$0xff] %vm573_vm4, %v567_v27 }
 0x168   : > { %940 = vrot.lane.b32.xlu1 %v2624_v21, %s2381_s13 }
 0x169   : > { %1171 = vrot.lane.b32.xlu0 %v2624_v21, %s2384_s21 }
 0x16b   : > { %v2684_v19 = vld [vmem:[#allocation2 + $0x40] sm:$0xff] }
 0x16c   : > { %972 = vrot.lane.b32.xlu1 %v2630_v25, %s2385_s22  ;;  %v2689_v45 = vld [vmem:[#allocation2 + $0x41] sm:$0xff] }
 0x16d   : > { %1425 = vrot.lane.b32.xlu0 %v2630_v25, %s2384_s21  ;;  %v2255_v33 = vpop.f32.mrf.mxu0  ;;  %v894_v14 = vld [vmem:[#allocation2 + $0x42] sm:$0xff]  ;;  %v2704_v46 = vld [vmem:[#allocation2 + $0x30] sm:$0xff] }
 0x16e   : > { %v570_v34 = vmax.f32 %v2255_v33, 0.0  ;;  %v2716_v49 = vld [vmem:[#allocation2 + $0x31] sm:$0xff] }
 0x16f   : > { %v546_v35 = vpop.f32.mrf.mxu0  ;;  %v2731_v53 = vld [vmem:[#allocation2 + $0x32] sm:$0xff] }
 0x170   : > { %1201 = vrot.lane.b32.xlu1 %v2622_v20, %s2381_s13  ;;  %601 = vst.msk [vmem:[#allocation2 + $0x61] sm:$0xff] %vm573_vm4, %v570_v34  ;;  %v569_v36 = vmax.f32 %v546_v35, 0.0  ;;  %v2129_v34 = vld [vmem:[%s3582_s2 + $0x30] sm:$0xff]  ;;  %v2863_v35 = vld [vmem:[%s3582_s2 + $0x78] sm:$0xff] }
 0x171   : > { %1447 = vrot.lane.b32.xlu0 %v2624_v21, %s2381_s13  ;;  %2319 = vmatprep.subr.mxu0 %v2863_v35 }
 0x172   : > { %600 = vst.msk [vmem:[#allocation2 + $0x51] sm:$0xff] %vm573_vm4, %v569_v36  ;;  %v994_v36 = vsel %vm573_vm4, %v2570_v29, %v2766_v24 }
 0x174   : > { %1233 = vrot.lane.b32.xlu1 %v2624_v21, %s2385_s22 }
 0x175   : > { %676 = vrot.lane.b32.xlu0 %v2664_v38, %s2381_s13 }
 0x177   : > { %v2741_v54 = vld [vmem:[#allocation2 + $0x61] sm:$0xff] }
 0x178   : > { %646 = vrot.lane.b32.xlu1 %v2670_v39, %s2384_s21  ;;  %v903_v55 = vld [vmem:[#allocation2 + $0x62] sm:$0xff] }
 0x179   : > { %708 = vrot.lane.b32.xlu0 %v2670_v39, %s2385_s22  ;;  %v2258_v40 = vpop.f32.mrf.mxu0  ;;  %v2754_v37 = vld [vmem:[#allocation2 + $0x60] sm:$0xff]  ;;  %v2768_v58 = vld [vmem:[#allocation2 + $0x50] sm:$0xff] }
 0x17a   : > { %v572_v41 = vmax.f32 %v2258_v40, 0.0  ;;  %v2776_v60 = vld [vmem:[#allocation2 + $0x51] sm:$0xff] }
 0x17b   : > { %v556_v43 = vpop.f32.mrf.mxu0  ;;  %v895_v61 = vld [vmem:[#allocation2 + $0x52] sm:$0xff] }
 0x17c   : > { %916 = vrot.lane.b32.xlu1 %v891_v42, %s2384_s21  ;;  %603 = vst.msk [vmem:[#allocation2 + $0x81] sm:$0xff] %vm573_vm4, %v572_v41  ;;  %v571_v44 = vmax.f32 %v556_v43, 0.0  ;;  %v2128_v43 = vld [vmem:[%s3582_s2 + $0x28] sm:$0xff] }
 0x17d   : > { %938 = vrot.lane.b32.xlu0 %v2670_v39, %s2381_s13 }
 0x17e   : > { %602 = vst.msk [vmem:[#allocation2 + $0x71] sm:$0xff] %vm573_vm4, %v571_v44 }
 0x180   : > { %1169 = vrot.lane.b32.xlu1 %v2670_v39, %s2384_s21 }
 0x181   : > { %970 = vrot.lane.b32.xlu0 %v891_v42, %s2385_s22 }
 0x183   : > { %v2805_v50 = vld [vmem:[#allocation2 + $0x81] sm:$0xff] }
 0x184   : > { %682 = vrot.lane.b32.xlu1 %v2684_v19, %s2381_s13  ;;  %v2815_v7 = vld [vmem:[#allocation2 + $0x82] sm:$0xff] }
 0x185   : > { %1423 = vrot.lane.b32.xlu0 %v891_v42, %s2384_s21  ;;  %v2825_v15 = vld [vmem:[#allocation2 + $0x80] sm:$0xff]  ;;  %v2827_v4 = vld [vmem:[#allocation2 + $0x70] sm:$0xff] }
 0x186   : > { %v2837_v26 = vld [vmem:[#allocation2 + $0x71] sm:$0xff] }
 0x187   : > { %v897_v47 = vld [vmem:[#allocation2 + $0x72] sm:$0xff] }
 0x188   : > { %714 = vrot.lane.b32.xlu1 %v2689_v45, %s2385_s22 }
 0x189   : > { %652 = vrot.lane.b32.xlu0 %v2689_v45, %s2384_s21 }
 0x18c   : > { %944 = vrot.lane.b32.xlu1 %v2689_v45, %s2381_s13 }
 0x18d   : > { %922 = vrot.lane.b32.xlu0 %v894_v14, %s2384_s21 }
 0x190   : > { %976 = vrot.lane.b32.xlu1 %v894_v14, %s2385_s22 }
 0x191   : > { %1175 = vrot.lane.b32.xlu0 %v2689_v45, %s2384_s21 }
 0x194   : > { %1205 = vrot.lane.b32.xlu1 %v2684_v19, %s2381_s13 }
 0x195   : > { %1429 = vrot.lane.b32.xlu0 %v894_v14, %s2384_s21 }
 0x198   : > { %1237 = vrot.lane.b32.xlu1 %v2689_v45, %s2385_s22 }
 0x199   : > { %680 = vrot.lane.b32.xlu0 %v2704_v46, %s2381_s13 }
 0x19c   : > { %1451 = vrot.lane.b32.xlu1 %v2689_v45, %s2381_s13 }
 0x19d   : > { %712 = vrot.lane.b32.xlu0 %v2716_v49, %s2385_s22 }
 0x1a0   : > { %1483 = vrot.lane.b32.xlu1 %v894_v14, %s2385_s22 }
 0x1a1   : > { %942 = vrot.lane.b32.xlu0 %v2716_v49, %s2381_s13 }
 0x1a4   : > { %650 = vrot.lane.b32.xlu1 %v2716_v49, %s2384_s21 }
 0x1a5   : > { %974 = vrot.lane.b32.xlu0 %v2731_v53, %s2385_s22 }
 0x1a8   : > { %920 = vrot.lane.b32.xlu1 %v2731_v53, %s2384_s21 }
 0x1a9   : > { %1203 = vrot.lane.b32.xlu0 %v2704_v46, %s2381_s13 }
 0x1ac   : > { %1235 = vrot.lane.b32.xlu1 %v2716_v49, %s2385_s22 }
 0x1ad   : > { %656 = vrot.lane.b32.xlu0 %v2741_v54, %s2384_s21 }
 0x1b0   : > { %1173 = vrot.lane.b32.xlu1 %v2716_v49, %s2384_s21 }
 0x1b1   : > { %948 = vrot.lane.b32.xlu0 %v2741_v54, %s2381_s13 }
 0x1b4   : > { %1427 = vrot.lane.b32.xlu1 %v2731_v53, %s2384_s21 }
 0x1b5   : > { %980 = vrot.lane.b32.xlu0 %v903_v55, %s2385_s22 }
 0x1b8   : > { %686 = vrot.lane.b32.xlu1 %v2754_v37, %s2381_s13 }
 0x1b9   : > { %926 = vrot.lane.b32.xlu0 %v903_v55, %s2384_s21 }
 0x1bc   : > { %718 = vrot.lane.b32.xlu1 %v2741_v54, %s2385_s22 }
 0x1bd   : > { %1179 = vrot.lane.b32.xlu0 %v2741_v54, %s2384_s21 }
 0x1c0   : > { %1209 = vrot.lane.b32.xlu1 %v2754_v37, %s2381_s13 }
 0x1c1   : > { %1433 = vrot.lane.b32.xlu0 %v903_v55, %s2384_s21 }
 0x1c4   : > { %1241 = vrot.lane.b32.xlu1 %v2741_v54, %s2385_s22 }
 0x1c5   : > { %684 = vrot.lane.b32.xlu0 %v2768_v58, %s2381_s13 }
 0x1c8   : > { %1455 = vrot.lane.b32.xlu1 %v2741_v54, %s2381_s13 }
 0x1c9   : > { %716 = vrot.lane.b32.xlu0 %v2776_v60, %s2385_s22 }
 0x1cc   : > { %1487 = vrot.lane.b32.xlu1 %v903_v55, %s2385_s22 }
 0x1cd   : > { %924 = vrot.lane.b32.xlu0 %v895_v61, %s2384_s21 }
 0x1d0   : > { %654 = vrot.lane.b32.xlu1 %v2776_v60, %s2384_s21 }
 0x1d1   : > { %1207 = vrot.lane.b32.xlu0 %v2768_v58, %s2381_s13 }
 0x1d2   : > { %v679_v63 = vpop.permute.xlu1 %678 }
 0x1d3   : > { %v2790_v0 = vpop.permute.xlu0 %648 }
 0x1d4   : > { %946 = vrot.lane.b32.xlu1 %v2776_v60, %s2381_s13 }
 0x1d5   : > { %1177 = vrot.lane.b32.xlu0 %v2776_v60, %s2384_s21 }
 0x1d6   : > { %v711_v1 = vpop.permute.xlu1 %710 }
 0x1d7   : > { %v2796_v2 = vpop.permute.xlu0 %918 }
 0x1d8   : > { %978 = vrot.lane.b32.xlu1 %v895_v61, %s2385_s22 }
 0x1d9   : > { %1453 = vrot.lane.b32.xlu0 %v2776_v60, %s2381_s13 }
 0x1da   : > { %v2801_v56 = vpop.permute.xlu1 %940 }
 0x1db   : > { %v2803_v3 = vpop.permute.xlu0 %1171 }
 0x1dc   : > { %1239 = vrot.lane.b32.xlu1 %v2776_v60, %s2385_s22 }
 0x1dd   : > { %952 = vrot.lane.b32.xlu0 %v2805_v50, %s2381_s13 }
 0x1de   : > { %v2811_v5 = vpop.permute.xlu1 %972 }
 0x1df   : > { %v2813_v6 = vpop.permute.xlu0 %1425 }
 0x1e0   : > { %1485 = vrot.lane.b32.xlu1 %v895_v61, %s2385_s22 }
 0x1e1   : > { %984 = vrot.lane.b32.xlu0 %v2815_v7, %s2385_s22 }
 0x1e2   : > { %v1202_v8 = vpop.permute.xlu1 %1201 }
 0x1e3   : > { %v2820_v9 = vpop.permute.xlu0 %1447 }
 0x1e4   : > { %1431 = vrot.lane.b32.xlu1 %v895_v61, %s2384_s21 }
 0x1e5   : > { %1183 = vrot.lane.b32.xlu0 %v2805_v50, %s2384_s21 }
 0x1e6   : > { %v1234_v12 = vpop.permute.xlu1 %1233 }
 0x1e7   : > { %v677_v13 = vpop.permute.xlu0 %676 }
 0x1e8   : > { %690 = vrot.lane.b32.xlu1 %v2825_v15, %s2381_s13  ;;  %v740_v17 = vsel %vm400_vm0, %v732_v16, %v677_v13 }
 0x1e9   : > { %688 = vrot.lane.b32.xlu0 %v2827_v4, %s2381_s13 }
 0x1ea   : > { %v647_v18 = vpop.permute.xlu1 %646 }
 0x1eb   : > { %v709_v22 = vpop.permute.xlu0 %708  ;;  %v733_v23 = vsel %vm573_vm4, %v2664_v38, %v647_v18 }
 0x1ec   : > { %v749_v27 = vsel %vm748_vm9, %v740_v17, %v709_v22  ;;  %v741_v30 = vsel %vm400_vm0, %v733_v23, %v679_v63  ;;  %722 = vrot.lane.b32.xlu1 %v2805_v50, %s2385_s22 }
 0x1ed   : > { %720 = vrot.lane.b32.xlu0 %v2837_v26, %s2385_s22  ;;  %2267 = vmatprep.mubr.msk.f32.mxu1 %vm409_vm6, %v749_v27  ;;  %v750_v31 = vsel %vm748_vm9, %v741_v30, %v711_v1 }
 0x1ee   : > { %v2850_v32 = vpop.permute.xlu1 %916  ;;  %2268 = vmatmul.mubr.msk.f32.vlgmr.msra.gmra.mxu1 %vm409_vm6, %v750_v31 }
 0x1ef   : > { %v939_v33 = vpop.permute.xlu0 %938  ;;  %2280 = vmatpush3.msra.mxu1 %v2130_v28 }
 0x1f0   : > { %1213 = vrot.lane.b32.xlu1 %v2825_v15, %s2381_s13  ;;  %2281 = vmatprep.subr.mxu1 %v2129_v34  ;;  %v1002_v40 = vsel %vm400_vm0, %v994_v36, %v939_v33 }
 0x1f1   : > { %1449 = vrot.lane.b32.xlu0 %v2716_v49, %s2381_s13  ;;  %2282 = vmatpush3.msra.mxu1 %v2129_v34  ;;  %v1422_v34 = vld [vmem:[#allocation2 + $0x92] sm:$0xff] }
 0x1f2   : > { %v1170_v41 = vpop.permute.xlu1 %1169  ;;  %2283 = vmatprep.subr.mxu1 %v2128_v43 }
 0x1f3   : > { %v971_v42 = vpop.permute.xlu0 %970  ;;  %v1257_v44 = vsel %vm573_vm4, %v2664_v38, %v1170_v41  ;;  %2284 = vmatpush3.msra.mxu1 %v2128_v43 }
 0x1f4   : > { %v2876_v14 = vsel %vm748_vm9, %v1002_v40, %v971_v42  ;;  %v1265_v29 = vsel %vm400_vm0, %v1257_v44, %v1202_v8  ;;  %1245 = vrot.lane.b32.xlu1 %v2805_v50, %s2385_s22  ;;  %2285 = vmatprep.subr.mxu1 %v2127_v48  ;;  %v1258_v42 = vsel %vm573_vm4, %v2622_v20, %v2803_v3 }
 0x1f5   : > { %928 = vrot.lane.b32.xlu0 %v897_v47, %s2384_s21  ;;  %v1273_v51 = vsel %vm748_vm9, %v1265_v29, %v1234_v12  ;;  %2286 = vmatpush3.msra.mxu1 %v2127_v48 }
 0x1f6   : > { %v683_v38 = vpop.permute.xlu1 %682  ;;  %2307 = vmatprep.mubr.msk.f32.mxu0 %vm409_vm6, %v1273_v51  ;;  %2339 = vmatprep.subr.mxu1 %v2863_v35  ;;  %v2960_v51 = vld [vmem:[%s3582_s2 + $0x70] sm:$0xff] }
 0x1f7   : > { %v2887_v52 = vpop.permute.xlu0 %1423 }
 0x1f8   : > { %1437 = vrot.lane.b32.xlu1 %v2815_v7, %s2384_s21 }
 0x1f9   : > { %1211 = vrot.lane.b32.xlu0 %v2827_v4, %s2381_s13 }
 0x1fa   : > { %v715_v55 = vpop.permute.xlu1 %714 }
 0x1fb   : > { %v2894_v57 = vpop.permute.xlu0 %652 }
 0x1fc   : > { %658 = vrot.lane.b32.xlu1 %v2837_v26, %s2384_s21 }
 0x1fd   : > { %1243 = vrot.lane.b32.xlu0 %v2837_v26, %s2385_s22 }
 0x1fe   : > { %v945_v24 = vpop.permute.xlu1 %944 }
 0x1ff   : > { %v2900_v61 = vpop.permute.xlu0 %922 }
 0x200   : > { %1459 = vrot.lane.b32.xlu1 %v2805_v50, %s2381_s13 }
 0x201   : > { %1181 = vrot.lane.b32.xlu0 %v2837_v26, %s2384_s21 }
 0x202   : > { %v977_v63 = vpop.permute.xlu1 %976 }
 0x203   : > { %v2906_v1 = vpop.permute.xlu0 %1175 }
 0x204   : > { %1461 = vrot.lane.b32.xlu1 %v2616_v10, %s2381_s13  ;;  %v734_v10 = vsel %vm573_vm4, %v2622_v20, %v2790_v0  ;;  %v2967_v20 = vld [vmem:[%s3582_s2 + $0x68] sm:$0xff] }
 0x205   : > { %1457 = vrot.lane.b32.xlu0 %v2837_v26, %s2381_s13 }
 0x206   : > { %v1206_v8 = vpop.permute.xlu1 %1205 }
 0x207   : > { %v2912_v11 = vpop.permute.xlu0 %1429 }
 0x208   : > { %950 = vrot.lane.b32.xlu1 %v2837_v26, %s2381_s13  ;;  %s2392_s13 = smov (!%p2164_p4), 4  }
 0x209   : > { %1479 = vrot.lane.b32.xlu0 %v2630_v25, %s2385_s22 }
 0x20a   : > { %v1238_v12 = vpop.permute.xlu1 %1237 }
 0x20b   : > { %v681_v13 = vpop.permute.xlu0 %680 }
 0x20c   : > { %982 = vrot.lane.b32.xlu1 %v897_v47, %s2385_s22  ;;  %v742_v16 = vsel %vm400_vm0, %v734_v10, %v681_v13 }
 0x20d   : > { %1481 = vrot.lane.b32.xlu0 %v2731_v53, %s2385_s22  ;;  %v996_v53 = vsel %vm573_vm4, %v2624_v21, %v2796_v2 }
 0x20e   : > { %v1452_v17 = vpop.permute.xlu1 %1451 }
 0x20f   : > { %v713_v18 = vpop.permute.xlu0 %712 }
 0x210   : > { %v751_v25 = vsel %vm748_vm9, %v742_v16, %v713_v18  ;;  %1491 = vrot.lane.b32.xlu1 %v2815_v7, %s2385_s22 }
 0x211   : > { %2270 = vmatprep.mubr.msk.f32.mxu1 %vm409_vm6, %v751_v25 }
 0x212   : > { %v1484_v22 = vpop.permute.xlu1 %1483 }
 0x213   : > { %v943_v23 = vpop.permute.xlu0 %942 }
 0x214   : > { %1489 = vrot.lane.b32.xlu1 %v897_v47, %s2385_s22  ;;  %v1004_v0 = vsel %vm400_vm0, %v996_v53, %v943_v23 }
 0x216   : > { %v651_v27 = vpop.permute.xlu1 %650 }
 0x217   : > { %v975_v28 = vpop.permute.xlu0 %974  ;;  %v735_v30 = vsel %vm573_vm4, %v2704_v46, %v651_v27 }
 0x218   : > { %v2937_v31 = vsel %vm748_vm9, %v1004_v0, %v975_v28  ;;  %v743_v7 = vsel %vm400_vm0, %v735_v30, %v683_v38  ;;  %1435 = vrot.lane.b32.xlu1 %v897_v47, %s2384_s21 }
 0x219   : > { %v752_v33 = vsel %vm748_vm9, %v743_v7, %v715_v55 }
 0x21a   : > { %v921_v36 = vpop.permute.xlu1 %920  ;;  %2271 = vmatmul.mubr.msk.f32.gmra.mxu1 %vm409_vm6, %v752_v33 }
 0x21b   : > { %v1204_v2 = vpop.permute.xlu0 %1203  ;;  %v997_v40 = vsel %vm573_vm4, %v2716_v49, %v921_v36 }
 0x21c   : > { %v1005_v41 = vsel %vm400_vm0, %v997_v40, %v945_v24  ;;  %1493 = vrot.lane.b32.xlu1 %v1422_v34, %s2385_s22  ;;  %v1266_v44 = vsel %vm400_vm0, %v1258_v42, %v1204_v2  ;;  %v2976_v24 = vld [vmem:[%s3582_s2 + $0x60] sm:$0xff] }
 0x21d   : > { %v2951_v43 = vsel %vm748_vm9, %v1005_v41, %v977_v63 }
 0x21e   : > { %v1236_v47 = vpop.permute.xlu1 %1235 }
 0x21f   : > { %v2954_v29 = vpop.permute.xlu0 %656  ;;  %v1274_v48 = vsel %vm748_vm9, %v1266_v44, %v1236_v47 }
 0x220   : > { %2308 = vmatmul.mubr.msk.f32.vlgmr.msra.gmra.mxu0 %vm409_vm6, %v1274_v48 }
 0x221   : > { %2320 = vmatpush3.msra.mxu0 %v2863_v35 }
 0x222   : > { %v1174_v3 = vpop.permute.xlu1 %1173  ;;  %2321 = vmatprep.subr.mxu0 %v2960_v51 }
 0x223   : > { %v949_v38 = vpop.permute.xlu0 %948  ;;  %v1259_v55 = vsel %vm573_vm4, %v2704_v46, %v1174_v3  ;;  %2322 = vmatpush3.msra.mxu0 %v2960_v51 }
 0x224   : > { %v1267_v63 = vsel %vm400_vm0, %v1259_v55, %v1206_v8  ;;  %2323 = vmatprep.subr.mxu0 %v2967_v20 }
 0x225   : > { %v1275_v13 = vsel %vm748_vm9, %v1267_v63, %v1238_v12  ;;  %2324 = vmatpush3.msra.mxu0 %v2967_v20 }
 0x226   : > { %v1428_v10 = vpop.permute.xlu1 %1427  ;;  %2310 = vmatprep.mubr.msk.f32.mxu0 %vm409_vm6, %v1275_v13  ;;  %2325 = vmatprep.subr.mxu0 %v2976_v24 }
 0x227   : > { %v981_v16 = vpop.permute.xlu0 %980  ;;  %v1505_v46 = vsel %vm573_vm4, %v2716_v49, %v1428_v10  ;;  %2326 = vmatpush3.msra.mxu0 %v2976_v24  ;;  %v736_v49 = vsel %vm573_vm4, %v2684_v19, %v2894_v57  ;;  %v1260_v10 = vsel %vm573_vm4, %v2684_v19, %v2906_v1 }
 0x228   : > { %v1513_v18 = vsel %vm400_vm0, %v1505_v46, %v1452_v17 }
 0x229   : > { %v2989_v8 = vsel %vm748_vm9, %v1513_v18, %v1484_v22 }
 0x22a   : > { %v687_v25 = vpop.permute.xlu1 %686 }
 0x22b   : > { %v2991_v12 = vpop.permute.xlu0 %926 }
 0x22e   : > { %v719_v23 = vpop.permute.xlu1 %718 }
 0x22f   : > { %v1180_v53 = vpop.permute.xlu0 %1179 }
 0x232   : > { %v1210_v0 = vpop.permute.xlu1 %1209 }
 0x233   : > { %v2993_v27 = vpop.permute.xlu0 %1433 }
 0x236   : > { %v1242_v28 = vpop.permute.xlu1 %1241 }
 0x237   : > { %v685_v30 = vpop.permute.xlu0 %684 }
 0x238   : > { %v744_v7 = vsel %vm400_vm0, %v736_v49, %v685_v30 }
 0x23a   : > { %v1456_v17 = vpop.permute.xlu1 %1455 }
 0x23b   : > { %v717_v33 = vpop.permute.xlu0 %716 }
 0x23c   : > { %v753_v22 = vsel %vm748_vm9, %v744_v7, %v717_v33 }
 0x23d   : > { %2273 = vmatprep.mubr.msk.f32.mxu1 %vm409_vm6, %v753_v22 }
 0x23e   : > { %v1488_v34 = vpop.permute.xlu1 %1487 }
 0x23f   : > { %v925_v36 = vpop.permute.xlu0 %924 }
 0x240   : > { %v999_v2 = vsel %vm573_vm4, %v2776_v60, %v925_v36 }
 0x241   : > { %v1007_v40 = vsel %vm400_vm0, %v999_v2, %v949_v38 }
 0x242   : > { %v3005_v41 = vsel %vm748_vm9, %v1007_v40, %v981_v16  ;;  %v655_v42 = vpop.permute.xlu1 %654 }
 0x243   : > { %v1208_v57 = vpop.permute.xlu0 %1207  ;;  %v737_v44 = vsel %vm573_vm4, %v2768_v58, %v655_v42 }
 0x244   : > { %v745_v47 = vsel %vm400_vm0, %v737_v44, %v687_v25  ;;  %v1268_v46 = vsel %vm400_vm0, %v1260_v10, %v1208_v57 }
 0x245   : > { %v754_v48 = vsel %vm748_vm9, %v745_v47, %v719_v23 }
 0x246   : > { %v3011_v3 = vpop.permute.xlu1 %946  ;;  %2274 = vmatmul.mubr.msk.f32.gmra.mxu1 %vm409_vm6, %v754_v48 }
 0x247   : > { %v1178_v55 = vpop.permute.xlu0 %1177 }
 0x248   : > { %v1261_v38 = vsel %vm573_vm4, %v2768_v58, %v1178_v55  ;;  %v1262_v55 = vsel %vm573_vm4, %v2754_v37, %v1180_v53 }
 0x249   : > { %v1269_v16 = vsel %vm400_vm0, %v1261_v38, %v1210_v0 }
 0x24a   : > { %v3016_v63 = vpop.permute.xlu1 %978  ;;  %v1277_v58 = vsel %vm748_vm9, %v1269_v16, %v1242_v28  ;;  %v738_v28 = vsel %vm573_vm4, %v2754_v37, %v2954_v29  ;;  %v995_v16 = vsel %vm573_vm4, %v2670_v39, %v2850_v32 }
 0x24b   : > { %v3018_v13 = vpop.permute.xlu0 %1453  ;;  %v1003_v53 = vsel %vm400_vm0, %v995_v16, %v2801_v56 }
 0x24e   : > { %v1240_v18 = vpop.permute.xlu1 %1239 }
 0x24f   : > { %v3025_v25 = vpop.permute.xlu0 %952  ;;  %v1276_v23 = vsel %vm748_vm9, %v1268_v46, %v1240_v18 }
 0x250   : > { %2311 = vmatmul.mubr.msk.f32.gmra.mxu0 %vm409_vm6, %v1276_v23 }
 0x251   : > { %2313 = vmatprep.mubr.msk.f32.mxu0 %vm409_vm6, %v1277_v58 }
 0x252   : > { %v3031_v30 = vpop.permute.xlu1 %1485 }
 0x253   : > { %v3033_v49 = vpop.permute.xlu0 %984 }
 0x256   : > { %v1432_v19 = vpop.permute.xlu1 %1431 }
 0x257   : > { %v1184_v1 = vpop.permute.xlu0 %1183  ;;  %v1507_v0 = vsel %vm573_vm4, %v2776_v60, %v1432_v19 }
 0x258   : > { %v1515_v7 = vsel %vm400_vm0, %v1507_v0, %v1456_v17  ;;  %v1264_v23 = vsel %vm573_vm4, %v2825_v15, %v1184_v1 }
 0x259   : > { %v3039_v33 = vsel %vm748_vm9, %v1515_v7, %v1488_v34  ;;  %v1272_v0 = vsel %vm400_vm0, %v1264_v23, %v2774_v59  ;;  %v1011_v7 = vsel %vm748_vm9, %v1003_v53, %v2811_v5  ;;  %v998_v5 = vsel %vm573_vm4, %v2689_v45, %v2900_v61 }
 0x25a   : > { %v691_v22 = vpop.permute.xlu1 %690  ;;  %v1280_v59 = vsel %vm748_vm9, %v1272_v0, %v2784_v62 }
 0x25b   : > { %v689_v36 = vpop.permute.xlu0 %688 }
 0x25c   : > { %v746_v2 = vsel %vm400_vm0, %v738_v28, %v689_v36 }
 0x25e   : > { %v723_v40 = vpop.permute.xlu1 %722 }
 0x25f   : > { %v721_v42 = vpop.permute.xlu0 %720 }
 0x260   : > { %v755_v57 = vsel %vm748_vm9, %v746_v2, %v721_v42 }
 0x261   : > { %2276 = vmatprep.mubr.msk.f32.mxu1 %vm409_vm6, %v755_v57 }
 0x262   : > { %v1214_v60 = vpop.permute.xlu1 %1213 }
 0x263   : > { %v1450_v44 = vpop.permute.xlu0 %1449 }
 0x266   : > { %v1246_v17 = vpop.permute.xlu1 %1245 }
 0x267   : > { %v929_v47 = vpop.permute.xlu0 %928 }
 0x268   : > { %v1001_v61 = vsel %vm573_vm4, %v2837_v26, %v929_v47 }
 0x26a   : > { %v3047_v34 = vpop.permute.xlu1 %1437 }
 0x26b   : > { %v1212_v48 = vpop.permute.xlu0 %1211 }
 0x26c   : > { %v1270_v29 = vsel %vm400_vm0, %v1262_v55, %v1212_v48 }
 0x26e   : > { %v659_v38 = vpop.permute.xlu1 %658 }
 0x26f   : > { %v1244_v10 = vpop.permute.xlu0 %1243  ;;  %v739_v46 = vsel %vm573_vm4, %v2827_v4, %v659_v38 }
 0x270   : > { %v1278_v18 = vsel %vm748_vm9, %v1270_v29, %v1244_v10  ;;  %v747_v58 = vsel %vm400_vm0, %v739_v46, %v691_v22 }
 0x271   : > { %2314 = vmatmul.mubr.msk.f32.gmra.mxu0 %vm409_vm6, %v1278_v18  ;;  %v756_v37 = vsel %vm748_vm9, %v747_v58, %v723_v40 }
 0x272   : > { %v3065_v19 = vpop.permute.xlu1 %1459  ;;  %2277 = vmatmul.mubr.msk.f32.gmra.mxu1 %vm409_vm6, %v756_v37 }
 0x273   : > { %v1182_v32 = vpop.permute.xlu0 %1181  ;;  %2287 = vmatprep.mubr.msk.f32.mxu1 %vm409_vm6, %v2876_v14  ;;  %v1006_v14 = vsel %vm400_vm0, %v998_v5, %v3011_v3 }
 0x274   : > { %v1263_v15 = vsel %vm573_vm4, %v2827_v4, %v1182_v32  ;;  %v1503_v4 = vsel %vm573_vm4, %v2670_v39, %v2887_v52  ;;  %v1014_v62 = vsel %vm748_vm9, %v1006_v14, %v3016_v63  ;;  %v1009_v63 = vsel %vm400_vm0, %v1001_v61, %v3025_v25 }
 0x275   : > { %v1271_v1 = vsel %vm400_vm0, %v1263_v15, %v1214_v60  ;;  %v1511_v52 = vsel %vm400_vm0, %v1503_v4, %v2820_v9  ;;  %v1000_v9 = vsel %vm573_vm4, %v2741_v54, %v2991_v12 }
 0x276   : > { %v1279_v56 = vsel %vm748_vm9, %v1271_v1, %v1246_v17  ;;  %v1462_v22 = vpop.permute.xlu1 %1461  ;;  %2288 = vmatmul.mubr.msk.f32.vlgmr.msra.gmra.mxu1 %vm409_vm6, %v1011_v7 }
 0x277   : > { %2316 = vmatprep.mubr.msk.f32.mxu0 %vm409_vm6, %v1279_v56  ;;  %v1458_v36 = vpop.permute.xlu0 %1457  ;;  %2290 = vmatprep.mubr.msk.f32.mxu1 %vm409_vm6, %v2937_v31 }
 0x278   : > { %2317 = vmatmul.mubr.msk.f32.gmra.mxu0 %vm409_vm6, %v1280_v59  ;;  %2343 = vmatpush3.msra.mxu1 %v2863_v35 }
 0x279   : > { %2340 = vmatprep.subr.mxu1 %v2960_v51 }
 0x27a   : > { %v951_v39 = vpop.permute.xlu1 %950  ;;  %2291 = vmatmul.mubr.msk.f32.gmra.mxu1 %vm409_vm6, %v2951_v43  ;;  %v1504_v43 = vsel %vm573_vm4, %v2624_v21, %v2813_v6 }
 0x27b   : > { %v1480_v31 = vpop.permute.xlu0 %1479  ;;  %2293 = vmatprep.mubr.msk.f32.mxu1 %vm409_vm6, %v1014_v62  ;;  %2344 = vmatpush3.msra.mxu1 %v2960_v51  ;;  %v1512_v3 = vsel %vm400_vm0, %v1504_v43, %v1450_v44  ;;  %v1008_v51 = vsel %vm400_vm0, %v1000_v9, %v951_v39 }
 0x27c   : > { %v1519_v35 = vsel %vm748_vm9, %v1511_v52, %v1480_v31  ;;  %2341 = vmatprep.subr.mxu1 %v2967_v20 }
 0x27d   : > { %2327 = vmatprep.mubr.msk.f32.mxu0 %vm409_vm6, %v1519_v35  ;;  %2345 = vmatpush3.msra.mxu1 %v2967_v20  ;;  %v1017_v20 = vsel %vm748_vm9, %v1009_v63, %v3033_v49  ;;  %v1508_v49 = vsel %vm573_vm4, %v2741_v54, %v2993_v27  ;;  %v1510_v54 = vsel %vm573_vm4, %v2805_v50, %v3047_v34 }
 0x27e   : > { %v983_v28 = vpop.permute.xlu1 %982  ;;  %2294 = vmatmul.mubr.msk.f32.gmra.mxu1 %vm409_vm6, %v3005_v41  ;;  %2342 = vmatprep.subr.mxu1 %v2976_v24  ;;  %v1506_v41 = vsel %vm573_vm4, %v2689_v45, %v2912_v11  ;;  %v1516_v45 = vsel %vm400_vm0, %v1508_v49, %v1458_v36 }
 0x27f   : > { %v1482_v2 = vpop.permute.xlu0 %1481  ;;  %v1016_v21 = vsel %vm748_vm9, %v1008_v51, %v983_v28  ;;  %2346 = vmatpush3.msra.mxu1 %v2976_v24  ;;  %v1514_v24 = vsel %vm400_vm0, %v1506_v41, %v3018_v13 }
 0x280   : > { %v1520_v6 = vsel %vm748_vm9, %v1512_v3, %v1482_v2  ;;  %2296 = vmatprep.mubr.msk.f32.mxu1 %vm409_vm6, %v1016_v21  ;;  %v1522_v25 = vsel %vm748_vm9, %v1514_v24, %v3031_v30 }
 0x281   : > { %2328 = vmatmul.mubr.msk.f32.vlgmr.msra.gmra.mxu0 %vm409_vm6, %v1520_v6 }
 0x282   : > { %v1492_v12 = vpop.permute.xlu1 %1491  ;;  %2297 = vmatmul.mubr.msk.f32.gmra.mxu1 %vm409_vm6, %v1017_v20 }
 0x283   : > { %2330 = vmatprep.mubr.msk.f32.mxu1 %vm409_vm6, %v2989_v8 }
 0x286   : > { %v1490_v40 = vpop.permute.xlu1 %1489  ;;  %2331 = vmatmul.mubr.msk.f32.vlgmr.msra.gmra.mxu1 %vm409_vm6, %v1522_v25 }
 0x287   : > { %2333 = vmatprep.mubr.msk.f32.mxu1 %vm409_vm6, %v3039_v33  ;;  %v1524_v11 = vsel %vm748_vm9, %v1516_v45, %v1490_v40  ;;  %v1518_v33 = vsel %vm400_vm0, %v1510_v54, %v1462_v22 }
 0x28a   : > { %v1436_v8 = vpop.permute.xlu1 %1435  ;;  %2334 = vmatmul.mubr.msk.f32.gmra.mxu1 %vm409_vm6, %v1524_v11 }
 0x28b   : > { %v1509_v13 = vsel %vm573_vm4, %v2837_v26, %v1436_v8 }
 0x28c   : > { %v1517_v30 = vsel %vm400_vm0, %v1509_v13, %v3065_v19 }
 0x28d   : > { %v1525_v27 = vsel %vm748_vm9, %v1517_v30, %v1492_v12 }
 0x28e   : > { %v1494_v42 = vpop.permute.xlu1 %1493  ;;  %2336 = vmatprep.mubr.msk.f32.mxu1 %vm409_vm6, %v1525_v27 }
 0x28f   : > { %v1526_v57 = vsel %vm748_vm9, %v1518_v33, %v1494_v42 }
 0x290   : > { %2337 = vmatmul.mubr.msk.f32.gmra.mxu1 %vm409_vm6, %v1526_v57 }
 0x2ae   : > { %v2269_v17 = vpop.f32.mrf.mxu1 }
 0x2b0   : > { %v3164_v47 = vpop.f32.mrf.mxu1 }
 0x2da   : > { %v3166_v34 = vpop.f32.mrf.mxu1 }
 0x2dc   : > { %v3168_v48 = vpop.f32.mrf.mxu1 }
 0x2e0   : > { %v2309_v60 = vpop.f32.mrf.mxu0 }
 0x2e1   : > { %1703 = vrot.lane.b32.xlu1 %v2309_v60, %s2384_s21 }
 0x2e2   : > { %v1376_v26 = vpop.f32.mrf.mxu0 }
 0x2e3   : > { %1701 = vrot.lane.b32.xlu0 %v1376_v26, %s2384_s21 }
 0x306   : > { %v3170_v55 = vpop.f32.mrf.mxu1 }
 0x308   : > { %v3172_v29 = vpop.f32.mrf.mxu1 }
 0x310   : > { %v2312_v44 = vpop.f32.mrf.mxu0 }
 0x311   : > { %1707 = vrot.lane.b32.xlu1 %v2312_v44, %s2384_s21 }
 0x312   : > { %v1386_v50 = vpop.f32.mrf.mxu0 }
 0x313   : > { %1705 = vrot.lane.b32.xlu0 %v1386_v50, %s2384_s21 }
 0x331   : > { %v2315_v38 = vpop.f32.mrf.mxu0 }
 0x332   : > { %1711 = vrot.lane.b32.xlu1 %v2315_v38, %s2384_s21  ;;  %v3175_v10 = vpop.f32.mrf.mxu1 }
 0x333   : > { %v1396_v16 = vpop.f32.mrf.mxu0 }
 0x334   : > { %1709 = vrot.lane.b32.xlu0 %v1396_v16, %s2384_s21  ;;  %v3178_v46 = vpop.f32.mrf.mxu1 }
 0x336   : > { %v2289_v18 = vpop.f32.mrf.mxu1 }
 0x338   : > { %v2318_v23 = vpop.f32.mrf.mxu0  ;;  %v1113_v58 = vpop.f32.mrf.mxu1 }
 0x339   : > { %1715 = vrot.lane.b32.xlu1 %v2318_v23, %s2384_s21 }
 0x33a   : > { %v1406_v37 = vpop.f32.mrf.mxu0  ;;  %v2292_v53 = vpop.f32.mrf.mxu1 }
 0x33b   : > { %1713 = vrot.lane.b32.xlu0 %v1406_v37, %s2384_s21  ;;  %s2163_s21 = sshll.u32 %s2430_s19, 6  ;;  %s2388_s19 = smov (!%p2164_p4), 124  }
 0x33c   : > { %v1123_v19 = vpop.f32.mrf.mxu1  ;;  %s3189_s12 = scalar_lea.vmem %s3585_s5, %s2163_s21 }
 0x33d   : > { %1671 = vrot.lane.b32.xlu1 %v2289_v18, %s2386_s8 }
 0x33e   : > { %v2295_v32 = vpop.f32.mrf.mxu1 }
 0x33f   : > { %1669 = vrot.lane.b32.xlu0 %v1113_v58, %s2386_s8 }
 0x340   : > { %v1133_v0 = vpop.f32.mrf.mxu1 }
 0x341   : > { %v2329_v15 = vpop.f32.mrf.mxu0 }
 0x342   : > { %1735 = vrot.lane.b32.xlu1 %v2329_v15, %s2387_s9  ;;  %v2298_v1 = vpop.f32.mrf.mxu1 }
 0x343   : > { %v1622_v7 = vpop.f32.mrf.mxu0 }
 0x344   : > { %1733 = vrot.lane.b32.xlu0 %v1622_v7, %s2387_s9  ;;  %v1143_v56 = vpop.f32.mrf.mxu1 }
 0x346   : > { %1675 = vrot.lane.b32.xlu1 %v2292_v53, %s2386_s8  ;;  %v2332_v22 = vpop.f32.mrf.mxu1 }
 0x348   : > { %1673 = vrot.lane.b32.xlu0 %v1123_v19, %s2386_s8  ;;  %v1632_v36 = vpop.f32.mrf.mxu1 }
 0x34a   : > { %1679 = vrot.lane.b32.xlu1 %v2295_v32, %s2386_s8  ;;  %v2335_v59 = vpop.f32.mrf.mxu1 }
 0x34c   : > { %1677 = vrot.lane.b32.xlu0 %v1133_v0, %s2386_s8  ;;  %v1642_v4 = vpop.f32.mrf.mxu1 }
 0x34e   : > { %1683 = vrot.lane.b32.xlu1 %v2298_v1, %s2386_s8 }
 0x350   : > { %1681 = vrot.lane.b32.xlu0 %v1143_v56, %s2386_s8  ;;  %v2338_v5 = vpop.f32.mrf.mxu1 }
 0x352   : > { %1739 = vrot.lane.b32.xlu1 %v2332_v22, %s2387_s9  ;;  %v1652_v14 = vpop.f32.mrf.mxu1 }
 0x353   : > { %v1704_v62 = vpop.permute.xlu1 %1703 }
 0x354   : > { %1737 = vrot.lane.b32.xlu0 %v1632_v36, %s2387_s9 }
 0x355   : > { %v1702_v39 = vpop.permute.xlu0 %1701 }
 0x356   : > { %1743 = vrot.lane.b32.xlu1 %v2335_v59, %s2387_s9 }
 0x358   : > { %1741 = vrot.lane.b32.xlu0 %v1642_v4, %s2387_s9 }
 0x35a   : > { %1747 = vrot.lane.b32.xlu1 %v2338_v5, %s2387_s9 }
 0x35c   : > { %1745 = vrot.lane.b32.xlu0 %v1652_v14, %s2387_s9 }
 0x383   : > { %v1708_v52 = vpop.permute.xlu1 %1707 }
 0x385   : > { %v1706_v31 = vpop.permute.xlu0 %1705 }
 0x3a4   : > { %v1712_v61 = vpop.permute.xlu1 %1711 }
 0x3a6   : > { %v1710_v35 = vpop.permute.xlu0 %1709 }
 0x3ab   : > { %v1716_v43 = vpop.permute.xlu1 %1715 }
 0x3ad   : > { %v1714_v9 = vpop.permute.xlu0 %1713 }
 0x3af   : > { %v1672_v3 = vpop.permute.xlu1 %1671 }
 0x3b0   : > { %v1759_v63 = vsel %vm1757_vm10, %v2269_v17, %v1672_v3 }
 0x3b1   : > { %v1670_v51 = vpop.permute.xlu0 %1669  ;;  %v1767_v2 = vsel %vm573_vm4, %v1759_v63, %v1704_v62 }
 0x3b2   : > { %v1758_v28 = vsel %vm1757_vm10, %v3164_v47, %v1670_v51 }
 0x3b3   : > { %v1766_v20 = vsel %vm573_vm4, %v1758_v28, %v1702_v39 }
 0x3b4   : > { %v1736_v21 = vpop.permute.xlu1 %1735 }
 0x3b5   : > { %v1776_v6 = vsel %vm1774_vm11, %v1767_v2, %v1736_v21 }
 0x3b6   : > { %1786 = vst.msk [vmem:[%s3189_s12 + $0x8] sm:$0xff] %vm400_vm0, %v1776_v6  ;;  %v1734_v12 = vpop.permute.xlu0 %1733 }
 0x3b7   : > { %v1775_v41 = vsel %vm1774_vm11, %v1766_v20, %v1734_v12 }
 0x3b8   : > { %1785 = vst.msk [vmem:[%s3189_s12] sm:$0xff] %vm400_vm0, %v1775_v41  ;;  %v1676_v24 = vpop.permute.xlu1 %1675 }
 0x3b9   : > { %v1761_v11 = vsel %vm1757_vm10, %v3166_v34, %v1676_v24 }
 0x3ba   : > { %v1674_v25 = vpop.permute.xlu0 %1673  ;;  %v1769_v30 = vsel %vm573_vm4, %v1761_v11, %v1708_v52 }
 0x3bb   : > { %v1760_v13 = vsel %vm1757_vm10, %v3168_v48, %v1674_v25 }
 0x3bc   : > { %v1680_v40 = vpop.permute.xlu1 %1679  ;;  %v1768_v42 = vsel %vm573_vm4, %v1760_v13, %v1706_v31 }
 0x3bd   : > { %v1763_v27 = vsel %vm1757_vm10, %v3170_v55, %v1680_v40 }
 0x3be   : > { %v1678_v49 = vpop.permute.xlu0 %1677  ;;  %v1771_v44 = vsel %vm573_vm4, %v1763_v27, %v1712_v61 }
 0x3bf   : > { %v1762_v60 = vsel %vm1757_vm10, %v3172_v29, %v1678_v49 }
 0x3c0   : > { %v1684_v45 = vpop.permute.xlu1 %1683  ;;  %v1770_v34 = vsel %vm573_vm4, %v1762_v60, %v1710_v35 }
 0x3c1   : > { %v1765_v17 = vsel %vm1757_vm10, %v3175_v10, %v1684_v45 }
 0x3c2   : > { %v1682_v8 = vpop.permute.xlu0 %1681  ;;  %v1773_v38 = vsel %vm573_vm4, %v1765_v17, %v1716_v43 }
 0x3c3   : > { %v1764_v55 = vsel %vm1757_vm10, %v3178_v46, %v1682_v8 }
 0x3c4   : > { %v1740_v54 = vpop.permute.xlu1 %1739  ;;  %v1772_v10 = vsel %vm573_vm4, %v1764_v55, %v1714_v9 }
 0x3c5   : > { %v1778_v33 = vsel %vm1774_vm11, %v1769_v30, %v1740_v54 }
 0x3c6   : > { %1788 = vst.msk [vmem:[%s3189_s12 + $0x18] sm:$0xff] %vm400_vm0, %v1778_v33  ;;  %v1738_v57 = vpop.permute.xlu0 %1737 }
 0x3c7   : > { %v1777_v26 = vsel %vm1774_vm11, %v1768_v42, %v1738_v57 }
 0x3c8   : > { %1787 = vst.msk [vmem:[%s3189_s12 + $0x10] sm:$0xff] %vm400_vm0, %v1777_v26  ;;  %v1744_v50 = vpop.permute.xlu1 %1743 }
 0x3c9   : > { %v1780_v47 = vsel %vm1774_vm11, %v1771_v44, %v1744_v50 }
 0x3ca   : > { %1790 = vst.msk [vmem:[%s3189_s12 + $0x28] sm:$0xff] %vm400_vm0, %v1780_v47  ;;  %v1742_v48 = vpop.permute.xlu0 %1741 }
 0x3cb   : > { %v1779_v29 = vsel %vm1774_vm11, %v1770_v34, %v1742_v48 }
 0x3cc   : > { %1789 = vst.msk [vmem:[%s3189_s12 + $0x20] sm:$0xff] %vm400_vm0, %v1779_v29  ;;  %v1748_v16 = vpop.permute.xlu1 %1747  ;;  %1796 = sbr.rel (%p2164_p4) target bundleno = 1582 (0x62e), region = 44 }
 0x3cd   : > { %v1782_v18 = vsel %vm1774_vm11, %v1773_v38, %v1748_v16 }
 0x3ce   : > { %1792 = vst.msk [vmem:[%s3189_s12 + $0x38] sm:$0xff] %vm400_vm0, %v1782_v18  ;;  %v1746_v23 = vpop.permute.xlu0 %1745 }
 0x3cf   : > { %v1781_v58 = vsel %vm1774_vm11, %v1772_v10, %v1746_v23 }
 0x3d0   : > { %1791 = vst.msk [vmem:[%s3189_s12 + $0x30] sm:$0xff] %vm400_vm0, %v1781_v58 }
 0x3d7   : > { %v3239_v46 = vld [vmem:[%s3585_s5] sm:$0xff]  ;;  %v3244_v37 = vld [vmem:[%s3585_s5 + $0x8] sm:$0xff]  ;;  %v3249_v53 = vld [vmem:[%s3585_s5 + $0x10] sm:$0xff] }
 0x3d8   : > { %v3254_v19 = vld [vmem:[%s3585_s5 + $0x18] sm:$0xff]  ;;  %v1813_v32 = vsel %vm400_vm0, %v3239_v46, 0.0  ;;  %v3261_v0 = vld [vmem:[%s3585_s5 + $0x20] sm:$0xff]  ;;  %v1816_v1 = vsel %vm400_vm0, %v3244_v37, 0.0  ;;  %v1819_v7 = vsel %vm400_vm0, %v3249_v53, 0.0  ;;  %v3275_v56 = vld [vmem:[%s3585_s5 + $0x48] sm:$0xff] }
 0x3d9   : > { %v3266_v15 = vld [vmem:[%s3585_s5 + $0x40] sm:$0xff]  ;;  %v3280_v22 = vld [vmem:[%s3585_s5 + $0x50] sm:$0xff]  ;;  %v3285_v36 = vld [vmem:[%s3585_s5 + $0x58] sm:$0xff]  ;;  %v1822_v4 = vsel %vm400_vm0, %v3254_v19, 0.0  ;;  %v1817_v52 = vsel %vm400_vm0, %v3275_v56, 0.0  ;;  %v1825_v9 = vsel %vm400_vm0, %v3261_v0, 0.0 }
 0x3da   : > { %v1814_v59 = vsel %vm400_vm0, %v3266_v15, 0.0  ;;  %v3294_v5 = vld [vmem:[%s3585_s5 + $0x28] sm:$0xff]  ;;  %v3299_v14 = vld [vmem:[%s3585_s5 + $0x60] sm:$0xff]  ;;  %v1820_v31 = vsel %vm400_vm0, %v3280_v22, 0.0  ;;  %v1823_v61 = vsel %vm400_vm0, %v3285_v36, 0.0  ;;  %v1818_v35 = vadd.f32 %v1817_v52, %v1816_v1  ;;  %v3319_v63 = vld [vmem:[%s3585_s5 + $0x30] sm:$0xff] }
 0x3db   : > { %v3304_v62 = vld [vmem:[%s3585_s5 + $0x68] sm:$0xff]  ;;  %v1815_v39 = vadd.f32 %v1814_v59, %v1813_v32  ;;  %v1821_v43 = vadd.f32 %v1820_v31, %v1819_v7  ;;  %v1826_v3 = vsel %vm400_vm0, %v3299_v14, 0.0  ;;  %v3324_v51 = vld [vmem:[%s3585_s5 + $0x70] sm:$0xff]  ;;  %v1824_v28 = vadd.f32 %v1823_v61, %v1822_v4  ;;  %v3334_v20 = vld [vmem:[%s3585_s5 + $0x38] sm:$0xff] }
 0x3dc   : > { %v1828_v2 = vsel %vm400_vm0, %v3294_v5, 0.0  ;;  %v1829_v21 = vsel %vm400_vm0, %v3304_v62, 0.0  ;;  %v3339_v12 = vld [vmem:[%s3585_s5 + $0x78] sm:$0xff]  ;;  %v1827_v41 = vadd.f32 %v1826_v3, %v1825_v9  ;;  %v1838_v24 = vsel %vm400_vm0, %v1818_v35, 0.0 }
 0x3dd   : > { %v1837_v6 = vsel %vm400_vm0, %v1815_v39, 0.0  ;;  %v1840_v25 = vsel %vm400_vm0, %v1821_v43, 0.0  ;;  %v1831_v40 = vsel %vm400_vm0, %v3319_v63, 0.0  ;;  %v1832_v49 = vsel %vm400_vm0, %v3324_v51, 0.0 }
 0x3de   : > { %v1839_v45 = vadd.f32 %v1838_v24, %v1837_v6  ;;  %v1830_v11 = vadd.f32 %v1829_v21, %v1828_v2  ;;  %v1842_v8 = vsel %vm400_vm0, %v1824_v28, 0.0  ;;  %v1834_v13 = vsel %vm400_vm0, %v3334_v20, 0.0 }
 0x3df   : > { %v1835_v30 = vsel %vm400_vm0, %v3339_v12, 0.0  ;;  %v1833_v27 = vadd.f32 %v1832_v49, %v1831_v40  ;;  %v1844_v33 = vsel %vm400_vm0, %v1827_v41, 0.0  ;;  %v1886_v4 = vlaneseq }
 0x3e0   : > { %v1841_v54 = vadd.f32 %v1840_v25, %v1839_v45  ;;  %v1836_v57 = vadd.f32 %v1835_v30, %v1834_v13  ;;  %v1846_v60 = vsel %vm400_vm0, %v1830_v11, 0.0 }
 0x3e1   : > { %v1848_v44 = vsel %vm400_vm0, %v1833_v27, 0.0  ;;  %v1887_v39 = vshrl.u32 %v1886_v4, 7 }
 0x3e2   : > { %v1843_v42 = vadd.f32 %v1842_v8, %v1841_v54  ;;  %v1850_v17 = vsel %vm400_vm0, %v1836_v57, 0.0 }
 0x3e3   : > { %v3363_v35 = vsub.s32 0, %v1887_v39 }
 0x3e4   : > { %v1845_v26 = vadd.f32 %v1844_v33, %v1843_v42 }
 0x3e6   : > { %v1847_v50 = vadd.f32 %v1846_v60, %v1845_v26 }
 0x3e8   : > { %v1849_v47 = vadd.f32 %v1848_v44, %v1847_v50 }
 0x3ea   : > { %v1851_v34 = vadd.f32 %v1850_v17, %v1849_v47 }
 0x3ec   : > { %v1852_v48 = vrot.slane %v1851_v34, 4 }
 0x3ee   : > { %v1853_v55 = vadd.f32 %v1852_v48, %v1851_v34 }
 0x3f0   : > { %v1854_v29 = vrot.slane %v1853_v55, 2 }
 0x3f2   : > { %v1855_v38 = vadd.f32 %v1854_v29, %v1853_v55 }
 0x3f4   : > { %v1856_v16 = vrot.slane %v1855_v38, 1 }
 0x3f6   : > { %v1857_v18 = vadd.f32 %v1856_v16, %v1855_v38 }
 0x3f8   : > { %1859 = vrot.lane.b32.xlu0 %v1857_v18, %s2388_s19  ;;  %1867 = vrot.lane.b32.xlu1 %v1857_v18, %s2389_s26 }
 0x3fc   : > { %1863 = vrot.lane.b32.xlu0 %v1857_v18, %s2390_s27 }
 0x46a   : > { %v1860_v10 = vpop.permute.xlu0 %1859  ;;  %v1868_v32 = vpop.permute.xlu1 %1867 }
 0x46b   : > { %v1862_v23 = vadd.f32 %v1860_v10, %v1857_v18 }
 0x46e   : > { %v1864_v58 = vpop.permute.xlu0 %1863 }
 0x46f   : > { %v1866_v1 = vadd.f32 %v1864_v58, %v1862_v23 }
 0x471   : > { %v1870_v7 = vadd.f32 %v1868_v32, %v1866_v1 }
 0x473   : > { %v1872_v59 = vmul.f32 0.001953125, %v1870_v7 }
 0x475   : > { %1877 = vrot.lane.b32.xlu0 %v1872_v59, %s2391_s28  ;;  %1874 = vrot.lane.b32.xlu1 %v1872_v59, %s2392_s13 }
 0x479   : > { %1880 = vrot.lane.b32.xlu1 %v1872_v59, %s2393_s29 }
 0x4e7   : > { %v1875_v52 = vpop.permute.xlu1 %1874  ;;  %v1878_v31 = vpop.permute.xlu0 %1877 }
 0x4e8   : > { %v1883_v61 = vsel %vm1757_vm10, %v1872_v59, %v1875_v52 }
 0x4e9   : > { %v1884_v43 = vsel %vm573_vm4, %v1883_v61, %v1878_v31 }
 0x4eb   : > { %v1881_v9 = vpop.permute.xlu1 %1880 }
 0x4ec   : > { %v1885_v3 = vsel %vm1774_vm11, %v1884_v43, %v1881_v9 }
 0x4ed   : > { %v1889_v28 = vrot.slane %v1885_v3, %v3363_v35 }
 0x4ef   : > { %v3369_v2 = vsub.f32 %v3239_v46, %v1889_v28  ;;  %v3372_v21 = vsub.f32 %v3244_v37, %v1889_v28  ;;  %v3375_v6 = vsub.f32 %v3249_v53, %v1889_v28  ;;  %v3378_v41 = vsub.f32 %v3266_v15, %v1889_v28 }
 0x4f0   : > { %v3381_v24 = vsub.f32 %v3275_v56, %v1889_v28  ;;  %v3384_v25 = vsub.f32 %v3280_v22, %v1889_v28  ;;  %v3387_v40 = vsub.f32 %v3254_v19, %v1889_v28  ;;  %v3390_v46 = vsub.f32 %v3261_v0, %v1889_v28 }
 0x4f1   : > { %v3393_v37 = vsub.f32 %v3285_v36, %v1889_v28  ;;  %v1906_v53 = vmul.f32 %v3369_v2, %v3369_v2  ;;  %v1907_v15 = vmul.f32 %v3372_v21, %v3372_v21  ;;  %v3400_v56 = vsub.f32 %v3294_v5, %v1889_v28 }
 0x4f2   : > { %v3403_v22 = vsub.f32 %v3319_v63, %v1889_v28  ;;  %v3406_v19 = vsub.f32 %v3299_v14, %v1889_v28  ;;  %v1908_v0 = vmul.f32 %v3375_v6, %v3375_v6  ;;  %v3411_v36 = vsub.f32 %v3304_v62, %v1889_v28 }
 0x4f3   : > { %v1914_v49 = vmul.f32 %v3378_v41, %v3378_v41  ;;  %v1915_v45 = vmul.f32 %v3381_v24, %v3381_v24  ;;  %v1916_v5 = vmul.f32 %v3384_v25, %v3384_v25  ;;  %v3420_v63 = vsub.f32 %v3324_v51, %v1889_v28 }
 0x4f4   : > { %v1909_v14 = vmul.f32 %v3387_v40, %v3387_v40  ;;  %v1910_v11 = vmul.f32 %v3390_v46, %v3390_v46  ;;  %v1917_v62 = vmul.f32 %v3393_v37, %v3393_v37  ;;  %v1922_v8 = vsel %vm400_vm0, %v1906_v53, 0.0 }
 0x4f5   : > { %v1923_v13 = vsel %vm400_vm0, %v1914_v49, 0.0  ;;  %v1925_v30 = vsel %vm400_vm0, %v1907_v15, 0.0  ;;  %v1926_v54 = vsel %vm400_vm0, %v1915_v45, 0.0  ;;  %v1918_v51 = vmul.f32 %v3406_v19, %v3406_v19 }
 0x4f6   : > { %v1924_v27 = vadd.f32 %v1923_v13, %v1922_v8  ;;  %v1928_v33 = vsel %vm400_vm0, %v1908_v0, 0.0  ;;  %v1929_v42 = vsel %vm400_vm0, %v1916_v5, 0.0  ;;  %v3437_v57 = vsub.f32 %v3334_v20, %v1889_v28 }
 0x4f7   : > { %v3440_v60 = vsub.f32 %v3339_v12, %v1889_v28  ;;  %v1927_v26 = vadd.f32 %v1926_v54, %v1925_v30  ;;  %v1911_v44 = vmul.f32 %v3400_v56, %v3400_v56  ;;  %v1919_v50 = vmul.f32 %v3411_v36, %v3411_v36 }
 0x4f8   : > { %v1931_v17 = vsel %vm400_vm0, %v1909_v14, 0.0  ;;  %v1932_v47 = vsel %vm400_vm0, %v1917_v62, 0.0  ;;  %v1912_v34 = vmul.f32 %v3403_v22, %v3403_v22  ;;  %v1930_v48 = vadd.f32 %v1929_v42, %v1928_v33 }
 0x4f9   : > { %v1920_v20 = vmul.f32 %v3420_v63, %v3420_v63  ;;  %v1934_v12 = vsel %vm400_vm0, %v1910_v11, 0.0  ;;  %v1935_v55 = vsel %vm400_vm0, %v1918_v51, 0.0  ;;  %v1946_v29 = vsel %vm400_vm0, %v1924_v27, 0.0  ;;  %v2002_v27 = vld [vmem:[%s3584_s4] sm:$0x1] }
 0x4fa   : > { %v1913_v38 = vmul.f32 %v3437_v57, %v3437_v57  ;;  %v1933_v16 = vadd.f32 %v1932_v47, %v1931_v17  ;;  %v1947_v18 = vsel %vm400_vm0, %v1927_v26, 0.0  ;;  %v1921_v10 = vmul.f32 %v3440_v60, %v3440_v60 }
 0x4fb   : > { %v1937_v23 = vsel %vm400_vm0, %v1911_v44, 0.0  ;;  %v1938_v58 = vsel %vm400_vm0, %v1919_v50, 0.0  ;;  %v1948_v32 = vadd.f32 %v1947_v18, %v1946_v29  ;;  %v1936_v1 = vadd.f32 %v1935_v55, %v1934_v12 }
 0x4fc   : > { %v1949_v7 = vsel %vm400_vm0, %v1930_v48, 0.0  ;;  %v1940_v59 = vsel %vm400_vm0, %v1912_v34, 0.0  ;;  %v1941_v4 = vsel %vm400_vm0, %v1920_v20, 0.0  ;;  %v1939_v52 = vadd.f32 %v1938_v58, %v1937_v23  ;;  %v1981_v20 = vld [vmem:[%s3583_s3] sm:$0x1] }
 0x4fd   : > { %v1950_v39 = vadd.f32 %v1949_v7, %v1948_v32  ;;  %v1951_v31 = vsel %vm400_vm0, %v1933_v16, 0.0  ;;  %v1943_v61 = vsel %vm400_vm0, %v1913_v38, 0.0  ;;  %v1944_v43 = vsel %vm400_vm0, %v1921_v10, 0.0 }
 0x4fe   : > { %v1942_v3 = vadd.f32 %v1941_v4, %v1940_v59  ;;  %v1953_v28 = vsel %vm400_vm0, %v1936_v1, 0.0  ;;  %v1945_v15 = vadd.f32 %v1944_v43, %v1943_v61  ;;  %v1955_v0 = vsel %vm400_vm0, %v1939_v52, 0.0 }
 0x4ff   : > { %v1952_v9 = vadd.f32 %v1951_v31, %v1950_v39  ;;  %v2007_v33 = vrot.slane %v2002_v27, %v3363_v35 }
 0x500   : > { %v1957_v45 = vsel %vm400_vm0, %v1942_v3, 0.0  ;;  %v1959_v14 = vsel %vm400_vm0, %v1945_v15, 0.0 }
 0x501   : > { %v1954_v53 = vadd.f32 %v1953_v28, %v1952_v9 }
 0x503   : > { %v1956_v49 = vadd.f32 %v1955_v0, %v1954_v53 }
 0x505   : > { %v1958_v5 = vadd.f32 %v1957_v45, %v1956_v49 }
 0x507   : > { %v1960_v11 = vadd.f32 %v1959_v14, %v1958_v5 }
 0x509   : > { %v1961_v62 = vrot.slane %v1960_v11, 4 }
 0x50b   : > { %v1962_v8 = vadd.f32 %v1961_v62, %v1960_v11 }
 0x50d   : > { %v1963_v13 = vrot.slane %v1962_v8, 2 }
 0x50f   : > { %v1964_v30 = vadd.f32 %v1963_v13, %v1962_v8 }
 0x511   : > { %v1965_v54 = vrot.slane %v1964_v30, 1 }
 0x513   : > { %v1966_v51 = vadd.f32 %v1965_v54, %v1964_v30 }
 0x515   : > { %1972 = vrot.lane.b32.xlu1 %v1966_v51, %s2390_s27  ;;  %1968 = vrot.lane.b32.xlu0 %v1966_v51, %s2388_s19 }
 0x519   : > { %1976 = vrot.lane.b32.xlu0 %v1966_v51, %s2389_s26 }
 0x51d   : > { %2008 = vrot.lane.b32.xlu0 %v2007_v33, %s2392_s13 }
 0x587   : > { %v1969_v42 = vpop.permute.xlu0 %1968  ;;  %v1973_v44 = vpop.permute.xlu1 %1972 }
 0x588   : > { %v1971_v26 = vadd.f32 %v1969_v42, %v1966_v51 }
 0x58a   : > { %v1975_v50 = vadd.f32 %v1973_v44, %v1971_v26 }
 0x58b   : > { %v1977_v17 = vpop.permute.xlu0 %1976 }
 0x58c   : > { %v1979_v47 = vadd.f32 %v1977_v17, %v1975_v50 }
 0x58e   : > { %v1980_v34 = vmul.f32 0.001953125, %v1979_v47 }
 0x58f   : > { %v2009_v38 = vpop.permute.xlu0 %2008 }
 0x590   : > { %v1982_v48 = vadd.f32 1e-05, %v1980_v34  ;;  %v2017_v4 = vsel %vm1757_vm10, %v2002_v27, %v2009_v38 }
 0x592   : > { %2370 = vrsqrt.f32 %v1982_v48 }
 0x59f   : > { %v2371_v12 = vpop.eup %2370 }
 0x5a0   : > { %v1984_v55 = vmul.f32 %v2371_v12, %v1981_v20 }
 0x5a2   : > { %v1989_v29 = vrot.slane %v1984_v55, %v3363_v35 }
 0x5a4   : > { %1993 = vrot.lane.b32.xlu0 %v1989_v29, %s2391_s28  ;;  %1990 = vrot.lane.b32.xlu1 %v1989_v29, %s2392_s13 }
 0x5a8   : > { %1996 = vrot.lane.b32.xlu1 %v1989_v29, %s2393_s29  ;;  %2014 = vrot.lane.b32.xlu0 %v2007_v33, %s2393_s29 }
 0x5ac   : > { %2011 = vrot.lane.b32.xlu1 %v2007_v33, %s2391_s28 }
 0x616   : > { %v1991_v16 = vpop.permute.xlu1 %1990  ;;  %v1994_v10 = vpop.permute.xlu0 %1993 }
 0x617   : > { %v1999_v18 = vsel %vm1757_vm10, %v1984_v55, %v1991_v16 }
 0x618   : > { %v2000_v23 = vsel %vm573_vm4, %v1999_v18, %v1994_v10 }
 0x61a   : > { %v1997_v58 = vpop.permute.xlu1 %1996  ;;  %v2015_v59 = vpop.permute.xlu0 %2014 }
 0x61b   : > { %v2001_v32 = vsel %vm1774_vm11, %v2000_v23, %v1997_v58 }
 0x61c   : > { %v2023_v1 = vrot.slane %v2001_v32, %v3363_v35 }
 0x61e   : > { %v2012_v7 = vpop.permute.xlu1 %2011  ;;  %v2024_v39 = vmul.f32 %v2023_v1, %v3369_v2  ;;  %v2025_v52 = vmul.f32 %v2023_v1, %v3372_v21  ;;  %v2026_v31 = vmul.f32 %v2023_v1, %v3375_v6  ;;  %v2027_v61 = vmul.f32 %v2023_v1, %v3387_v40 }
 0x61f   : > { %v2028_v43 = vmul.f32 %v2023_v1, %v3390_v46  ;;  %v2029_v9 = vmul.f32 %v2023_v1, %v3400_v56  ;;  %v2018_v3 = vsel %vm573_vm4, %v2017_v4, %v2012_v7  ;;  %v2030_v28 = vmul.f32 %v2023_v1, %v3403_v22 }
 0x620   : > { %v2031_v53 = vmul.f32 %v2023_v1, %v3437_v57  ;;  %v2032_v15 = vmul.f32 %v2023_v1, %v3378_v41  ;;  %v2019_v2 = vsel %vm1774_vm11, %v2018_v3, %v2015_v59  ;;  %v2033_v21 = vmul.f32 %v2023_v1, %v3381_v24 }
 0x621   : > { %v2034_v6 = vmul.f32 %v2023_v1, %v3384_v25  ;;  %v2035_v40 = vmul.f32 %v2023_v1, %v3393_v37  ;;  %v2043_v46 = vrot.slane %v2019_v2, %v3363_v35  ;;  %v2036_v56 = vmul.f32 %v2023_v1, %v3406_v19 }
 0x622   : > { %v2037_v0 = vmul.f32 %v2023_v1, %v3411_v36  ;;  %v2038_v22 = vmul.f32 %v2023_v1, %v3420_v63  ;;  %v2039_v57 = vmul.f32 %v2023_v1, %v3440_v60 }
 0x623   : > { %v2044_v49 = vadd.f32 %v2043_v46, %v2024_v39  ;;  %v2045_v41 = vadd.f32 %v2043_v46, %v2025_v52  ;;  %v2046_v45 = vadd.f32 %v2043_v46, %v2026_v31  ;;  %v2047_v5 = vadd.f32 %v2043_v46, %v2027_v61 }
 0x624   : > { %v2048_v14 = vadd.f32 %v2043_v46, %v2028_v43  ;;  %v2049_v24 = vadd.f32 %v2043_v46, %v2029_v9  ;;  %v2050_v11 = vadd.f32 %v2043_v46, %v2030_v28  ;;  %v2051_v25 = vadd.f32 %v2043_v46, %v2031_v53 }
 0x625   : > { %v2052_v62 = vadd.f32 %v2043_v46, %v2032_v15  ;;  %v2053_v37 = vadd.f32 %v2043_v46, %v2033_v21  ;;  %v2054_v8 = vadd.f32 %v2043_v46, %v2034_v6  ;;  %v2055_v35 = vadd.f32 %v2043_v46, %v2035_v40  ;;  %2060 = vst.msk [vmem:[%s3585_s5] sm:$0xff] %vm400_vm0, %v2044_v49 }
 0x626   : > { %2061 = vst.msk [vmem:[%s3585_s5 + $0x8] sm:$0xff] %vm400_vm0, %v2045_v41  ;;  %2062 = vst.msk [vmem:[%s3585_s5 + $0x10] sm:$0xff] %vm400_vm0, %v2046_v45  ;;  %v2056_v19 = vadd.f32 %v2043_v46, %v2036_v56  ;;  %v2057_v36 = vadd.f32 %v2043_v46, %v2037_v0  ;;  %v2058_v63 = vadd.f32 %v2043_v46, %v2038_v22 }
 0x627   : > { %2063 = vst.msk [vmem:[%s3585_s5 + $0x18] sm:$0xff] %vm400_vm0, %v2047_v5  ;;  %v2059_v60 = vadd.f32 %v2043_v46, %v2039_v57  ;;  %2064 = vst.msk [vmem:[%s3585_s5 + $0x20] sm:$0xff] %vm400_vm0, %v2048_v14 }
 0x628   : > { %2065 = vst.msk [vmem:[%s3585_s5 + $0x28] sm:$0xff] %vm400_vm0, %v2049_v24  ;;  %2066 = vst.msk [vmem:[%s3585_s5 + $0x30] sm:$0xff] %vm400_vm0, %v2050_v11 }
 0x629   : > { %2067 = vst.msk [vmem:[%s3585_s5 + $0x38] sm:$0xff] %vm400_vm0, %v2051_v25  ;;  %2068 = vst.msk [vmem:[%s3585_s5 + $0x40] sm:$0xff] %vm400_vm0, %v2052_v62 }
 0x62a   : > { %2069 = vst.msk [vmem:[%s3585_s5 + $0x48] sm:$0xff] %vm400_vm0, %v2053_v37  ;;  %2070 = vst.msk [vmem:[%s3585_s5 + $0x50] sm:$0xff] %vm400_vm0, %v2054_v8 }
 0x62b   : > { %2071 = vst.msk [vmem:[%s3585_s5 + $0x58] sm:$0xff] %vm400_vm0, %v2055_v35  ;;  %2072 = vst.msk [vmem:[%s3585_s5 + $0x60] sm:$0xff] %vm400_vm0, %v2056_v19 }
 0x62c   : > { %2073 = vst.msk [vmem:[%s3585_s5 + $0x68] sm:$0xff] %vm400_vm0, %v2057_v36  ;;  %2074 = vst.msk [vmem:[%s3585_s5 + $0x70] sm:$0xff] %vm400_vm0, %v2058_v63 }
 0x62d   : > { %2075 = vst.msk [vmem:[%s3585_s5 + $0x78] sm:$0xff] %vm400_vm0, %v2059_v60 }
 0x62e PF: > { %s15_s18 = sadd.s32 1, %s2378_s18  }
 0x62f   : > { %p12_p5 = scmp.ge.s32.totalorder %s15_s18, 4  }
 0x631   :  { %14 = sbr.rel (!%p12_p5) target bundleno = 1 (0x1), region = 76 }

</bundles_post_ra>
